<compile_context>
chip_gen: v7x
topology: tpu7x:2x2x1
jax: 0.10.0
libtpu: 0.0.40
codegen_flags: <defaults>
</compile_context>

<pallas_src>
import numpy as np
import jax
import jax.numpy as jnp
from jax.experimental import pallas as pl
from jax.experimental.pallas import tpu as pltpu

IN_DIM = 3
HIDDEN = 64
PACK = 2 * HIDDEN            # two 64-wide streams per 128-lane slab
OUT_DIM = 1
DEPTH = 4
NUM_HID = DEPTH - 1          # three (Linear(H,H) + Tanh) blocks after the first layer


def _round_up(n, m):
    return ((n + m - 1) // m) * m


# ----------------------------------------------------------------------------
# Pallas kernel factory (padded batch sizes baked in as Python constants).
# ----------------------------------------------------------------------------
def make_pinn_kernel(nd_p, np_p):
    nb = nd_p + np_p
    f32 = jnp.float32

    def kernel(xd0, xd1, xd2, yd, xp0, xp1, xp2, dmask, pmask,
               wx2, wy2, wt2, bin2, g1p, g2s, g2u, g3u,
               whid, bhid, wout, maskl, scal, out_ref):
        # SMEM scalars
        alpha = scal[0]
        lam = scal[1]
        b_out = scal[2]
        inv_nd = scal[3]
        inv_np = scal[4]

        wxd = wx2[...]          # (1,128) = [wx | wx]
        wyd = wy2[...]
        wtd = wt2[...]
        b0 = bin2[...]          # (1,128) = [b_in | b_in]

        # ---- first layer (K=3): three VPU broadcast FMAs, duplicated lane halves ----
        a_d = jnp.tanh(b0 + xd0[...] * wxd + xd1[...] * wyd + xd2[...] * wtd)  # (nd_p,128)
        a_p = jnp.tanh(b0 + xp0[...] * wxd + xp1[...] * wyd + xp2[...] * wtd)  # (np_p,128)

        ss = 1.0 - a_p * a_p          # [s | s]   (tanh')
        uu = -2.0 * a_p * ss          # [u | u]   (tanh'' factor)

        P = jnp.concatenate([a_d, a_p], axis=0)      # (nb,128) primals, duplicated halves
        G1 = ss * g1p[...]                           # [gx  | gy ]
        G2 = ss * g2s[...] + uu * g2u[...]           # [gt  | ggx]
        G3 = uu * g3u[...]                           # [ggy | 0  ]

        ml = maskl[...]               # (1,128): ones on lanes 0..63
        mr = 1.0 - ml                 # ones on lanes 64..127

        # ---- hidden layers: ONE lane-packed block-diagonal matmul per layer ----
        for i in range(NUM_HID):
            stack = jnp.concatenate([P, G1, G2, G3], axis=0)          # (nb+3*np_p,128)
            z = jnp.dot(stack, whid[i], preferred_element_type=f32)   # (rows,128)
            zP = z[0:nb, :]
            zG1 = z[nb:nb + np_p, :]                    # [gz_x  | gz_y ]
            zG2 = z[nb + np_p:nb + 2 * np_p, :]         # [gz_t  | ggz_x]
            zG3 = z[nb + 2 * np_p:nb + 3 * np_p, :]     # [ggz_y | 0    ]

            P = jnp.tanh(zP + bhid[i])                  # bias only on primal rows
            a_p = P[nd_p:nb, :]                         # [a_phys | a_phys]
            ss = 1.0 - a_p * a_p
            uu = -2.0 * a_p * ss
            # second-order cross terms: [u gz_x^2 | u gz_y^2] rolled by 64 lanes
            q_roll = pltpu.roll(uu * zG1 * zG1, shift=HIDDEN, axis=1)
            if i + 1 < NUM_HID:
                G1 = ss * zG1                           # gx/gy dead after the last layer
            G2 = ss * zG2 + q_roll * mr                 # [s gz_t | s ggz_x + u gz_x^2]
            G3 = ss * zG3 + q_roll * ml                 # [s ggz_y + u gz_y^2 | 0]

        # ---- output: residual formed on VPU first, projection = lane reduce ----
        w_o = wout[...]                                 # (1,128) = [w_out^T | 0]
        a_data = P[0:nd_p, :]
        y_pred = jnp.sum(a_data * w_o, axis=1, keepdims=True) + b_out   # (nd_p,1)
        diff = y_pred - yd[...]
        data2d = jnp.sum(diff * diff * dmask[...], axis=0, keepdims=True) * inv_nd

        # rfeat left half = gt - alpha*(ggx + ggy); right half is dead (w_o right half = 0)
        rfeat = G2 - alpha * (pltpu.roll(G2, shift=HIDDEN, axis=1) + G3)
        residual = jnp.sum(rfeat * w_o, axis=1, keepdims=True)          # (np_p,1)
        pde2d = jnp.sum(residual * residual * pmask[...], axis=0, keepdims=True) * inv_np

        total2d = data2d + lam * pde2d

        # Pack [total, data, pde] into lanes 0..2 of a single (1,128) VMEM store.
        lane = jax.lax.broadcasted_iota(jnp.int32, (1, PACK), 1)
        out_ref[...] = (jnp.where(lane == 0, total2d, 0.0)
                        + jnp.where(lane == 1, data2d, 0.0)
                        + jnp.where(lane == 2, pde2d, 0.0))

    return kernel


# ----------------------------------------------------------------------------
# Wrapper
# ----------------------------------------------------------------------------
@jax.jit
def pinn_loss_pallas(x_data, y_data, x_phys,
                     w_in, b_in, w_hid, b_hid, w_out, b_out,
                     log_lambda, log_alpha):
    """Returns (total, data_loss, pde_loss, alpha, lambda_pde) as device scalars."""
    f32 = jnp.float32
    nd = x_data.shape[0]
    npt = x_phys.shape[0]
    nd_p = _round_up(nd, 8)
    np_p = _round_up(npt, 8)

    def pad_rows(a, n_to):
        pad = n_to - a.shape[0]
        return a if pad == 0 else jnp.pad(a, ((0, pad), (0, 0)))

    xd = pad_rows(x_data.astype(f32), nd_p)
    yd = pad_rows(y_data.astype(f32), nd_p)
    xp = pad_rows(x_phys.astype(f32), np_p)

    dmask = (jnp.arange(nd_p) < nd).astype(f32)[:, None]     # (nd_p,1)
    pmask = (jnp.arange(np_p) < npt).astype(f32)[:, None]    # (np_p,1)

    # Per-coordinate column vectors (avoids in-kernel lane slicing of the (N,3) inputs).
    xd0, xd1, xd2 = xd[:, 0:1], xd[:, 1:2], xd[:, 2:3]
    xp0, xp1, xp2 = xp[:, 0:1], xp[:, 1:2], xp[:, 2:3]

    # Lane-packed / duplicated first-layer weights and tangent-init packs.
    wx, wy, wt = w_in[0:1, :], w_in[1:2, :], w_in[2:3, :]
    z64 = jnp.zeros((1, HIDDEN), f32)
    wx2 = jnp.concatenate([wx, wx], axis=1)
    wy2 = jnp.concatenate([wy, wy], axis=1)
    wt2 = jnp.concatenate([wt, wt], axis=1)
    bin2 = jnp.concatenate([b_in, b_in], axis=1)
    g1p = jnp.concatenate([wx, wy], axis=1)            # -> [s*wx | s*wy]
    g2s = jnp.concatenate([wt, z64], axis=1)           # -> [s*wt | 0   ]
    g2u = jnp.concatenate([z64, wx * wx], axis=1)      # -> [0    | u*wx^2]
    g3u = jnp.concatenate([wy * wy, z64], axis=1)      # -> [u*wy^2 | 0 ]

    # Block-diagonal hidden weights / duplicated biases: (H,H) -> (2H,2H).
    zHH = jnp.zeros((HIDDEN, HIDDEN), f32)
    whid2 = jnp.stack([
        jnp.concatenate([jnp.concatenate([w_hid[i], zHH], axis=1),
                         jnp.concatenate([zHH, w_hid[i]], axis=1)], axis=0)
        for i in range(NUM_HID)])                      # (NUM_HID,128,128)
    bhid2 = jnp.concatenate([b_hid, b_hid], axis=2)    # (NUM_HID,1,128)

    wout2 = jnp.concatenate([w_out.T, z64], axis=1)    # (1,128) = [w_out^T | 0]
    maskl = jnp.concatenate([jnp.ones((1, HIDDEN), f32),
                             jnp.zeros((1, HIDDEN), f32)], axis=1)

    alpha = jnp.exp(log_alpha).reshape(()).astype(f32)
    lam = jnp.exp(log_lambda).reshape(()).astype(f32)
    scal = jnp.stack([alpha, lam, b_out.reshape(()).astype(f32),
                      jnp.float32(1.0 / nd), jnp.float32(1.0 / npt)])   # (5,)

    kernel = make_pinn_kernel(nd_p, np_p)
    vmem = pl.BlockSpec(memory_space=pltpu.MemorySpace.VMEM)
    smem = pl.BlockSpec(memory_space=pltpu.MemorySpace.SMEM)

    out = pl.pallas_call(
        kernel,
        out_shape=jax.ShapeDtypeStruct((1, PACK), f32),
        in_specs=[vmem] * 21 + [smem],
        out_specs=vmem,
    )(xd0, xd1, xd2, yd, xp0, xp1, xp2, dmask, pmask,
      wx2, wy2, wt2, bin2, g1p, g2s, g2u, g3u,
      whid2, bhid2, wout2, maskl, scal)

    # Device scalars; no .item()/host sync on the hot path.
    return out[0, 0], out[0, 1], out[0, 2], alpha, lam


# ----------------------------------------------------------------------------
# Pure-JAX reference (jax.jvp derivatives, highest-precision dots) for validation.
# ----------------------------------------------------------------------------
def mlp_ref(params, x):
    w_in, b_in, w_hid, b_hid, w_out, b_out = params
    hp = jax.lax.Precision.HIGHEST
    h = jnp.tanh(jnp.dot(x, w_in, precision=hp) + b_in)
    for i in range(NUM_HID):
        h = jnp.tanh(jnp.dot(h, w_hid[i], precision=hp) + b_hid[i])
    return jnp.dot(h, w_out, precision=hp) + b_out


def pinn_loss_ref(params, log_lambda, log_alpha, x_data, y_data, x_phys):
    alpha = jnp.exp(log_alpha)[0, 0]
    lam = jnp.exp(log_lambda)[0, 0]
    y_pred = mlp_ref(params, x_data)
    data_loss = jnp.mean((y_pred - y_data) ** 2)

    def f(x):
        return mlp_ref(params, x)[:, 0]

    def basis(i):
        return jnp.zeros_like(x_phys).at[:, i].set(1.0)

    dT_dt = jax.jvp(f, (x_phys,), (basis(2),))[1]

    def second(i):
        v = basis(i)
        g = lambda x: jax.jvp(f, (x,), (v,))[1]
        return jax.jvp(g, (x_phys,), (v,))[1]

    d2x = second(0)
    d2y = second(1)
    residual = dT_dt - alpha * (d2x + d2y)
    pde_loss = jnp.mean(residual ** 2)
    total = data_loss + lam * pde_loss
    return total, data_loss, pde_loss


# ----------------------------------------------------------------------------
# Deterministic init (PyTorch nn.Linear style: U(-1/sqrt(fan_in), 1/sqrt(fan_in)))
# ----------------------------------------------------------------------------
def init_linear(key, fan_in, fan_out):
    kw, kb = jax.random.split(key)
    bound = 1.0 / np.sqrt(fan_in)
    w = jax.random.uniform(kw, (fan_in, fan_out), jnp.float32, -bound, bound)
    b = jax.random.uniform(kb, (1, fan_out), jnp.float32, -bound, bound)
    return w, b


if __name__ == "__main__":
    key = jax.random.PRNGKey(0)
    keys = jax.random.split(key, 8)

    Nd, Np = 32, 32  # small batches of data / collocation points

    w_in, b_in = init_linear(keys[0], IN_DIM, HIDDEN)
    whs, bhs = [], []
    for i in range(NUM_HID):
        w, b = init_linear(keys[1 + i], HIDDEN, HIDDEN)
        whs.append(w)
        bhs.append(b)
    w_hid = jnp.stack(whs)          # (NUM_HID, H, H)
    b_hid = jnp.stack(bhs)          # (NUM_HID, 1, H)
    w_out, b_out = init_linear(keys[4], HIDDEN, OUT_DIM)

    log_lambda = jnp.full((1, 1), -2.0, jnp.float32)   # nn.Parameter([-2.0])
    log_alpha = jnp.full((1, 1), -4.0, jnp.float32)    # nn.Parameter([-4.0])

    x_data = jax.random.normal(keys[5], (Nd, IN_DIM), jnp.float32)
    y_data = jax.random.normal(keys[6], (Nd, OUT_DIM), jnp.float32)
    x_phys = jax.random.normal(keys[7], (Np, IN_DIM), jnp.float32)

    total, data_l, pde_l, alpha_v, lam_v = pinn_loss_pallas(
        x_data, y_data, x_phys,
        w_in, b_in, w_hid, b_hid, w_out, b_out, log_lambda, log_alpha)
    jax.block_until_ready((total, data_l, pde_l, alpha_v, lam_v))

    # Validate against pure-JAX autodiff reference (kernel uses default MXU precision,
    # so the second-derivative-based pde_loss gets a looser tolerance).
    params = (w_in, b_in, w_hid, b_hid, w_out, b_out)
    t_ref, d_ref, p_ref = pinn_loss_ref(params, log_lambda, log_alpha,
                                        x_data, y_data, x_phys)
    np.testing.assert_allclose(np.array(total), np.array(t_ref), rtol=2e-2, atol=1e-6)
    np.testing.assert_allclose(np.array(data_l), np.array(d_ref), rtol=2e-2, atol=1e-6)
    np.testing.assert_allclose(np.array(pde_l), np.array(p_ref), rtol=1e-1, atol=1e-7)
    np.testing.assert_allclose(np.array(alpha_v), float(np.exp(-4.0)), rtol=1e-5)
    np.testing.assert_allclose(np.array(lam_v), float(np.exp(-2.0)), rtol=1e-5)

    print("KERNEL_OK")
</pallas_src>

<mosaic_0001>
module attributes {stable_mosaic.version = 11 : i64} {
  func.func @kernel(%arg0: memref<32x1xf32, #tpu.memory_space<vmem>>, %arg1: memref<32x1xf32, #tpu.memory_space<vmem>>, %arg2: memref<32x1xf32, #tpu.memory_space<vmem>>, %arg3: memref<32x1xf32, #tpu.memory_space<vmem>>, %arg4: memref<32x1xf32, #tpu.memory_space<vmem>>, %arg5: memref<32x1xf32, #tpu.memory_space<vmem>>, %arg6: memref<32x1xf32, #tpu.memory_space<vmem>>, %arg7: memref<32x1xf32, #tpu.memory_space<vmem>>, %arg8: memref<32x1xf32, #tpu.memory_space<vmem>>, %arg9: memref<1x128xf32, #tpu.memory_space<vmem>>, %arg10: memref<1x128xf32, #tpu.memory_space<vmem>>, %arg11: memref<1x128xf32, #tpu.memory_space<vmem>>, %arg12: memref<1x128xf32, #tpu.memory_space<vmem>>, %arg13: memref<1x128xf32, #tpu.memory_space<vmem>>, %arg14: memref<1x128xf32, #tpu.memory_space<vmem>>, %arg15: memref<1x128xf32, #tpu.memory_space<vmem>>, %arg16: memref<1x128xf32, #tpu.memory_space<vmem>>, %arg17: memref<3x128x128xf32, #tpu.memory_space<vmem>>, %arg18: memref<3x1x128xf32, #tpu.memory_space<vmem>>, %arg19: memref<1x128xf32, #tpu.memory_space<vmem>>, %arg20: memref<1x128xf32, #tpu.memory_space<vmem>>, %arg21: memref<5xf32, #tpu.memory_space<smem>>, %arg22: memref<1x128xf32, #tpu.memory_space<vmem>>) attributes {dimension_semantics = [], scalar_prefetch = 0 : i64, scratch_operands = 0 : i64, tpu.core_type = #tpu.core_type<tc>} {
    %c0 = arith.constant 0 : index
    %0 = memref.load %arg21[%c0] : memref<5xf32, #tpu.memory_space<smem>>
    %c1 = arith.constant 1 : index
    %1 = memref.load %arg21[%c1] : memref<5xf32, #tpu.memory_space<smem>>
    %c2 = arith.constant 2 : index
    %2 = memref.load %arg21[%c2] : memref<5xf32, #tpu.memory_space<smem>>
    %c3 = arith.constant 3 : index
    %3 = memref.load %arg21[%c3] : memref<5xf32, #tpu.memory_space<smem>>
    %c4 = arith.constant 4 : index
    %4 = memref.load %arg21[%c4] : memref<5xf32, #tpu.memory_space<smem>>
    %c0_0 = arith.constant 0 : index
    %c0_1 = arith.constant 0 : index
    %5 = vector.load %arg9[%c0_0, %c0_1] : memref<1x128xf32, #tpu.memory_space<vmem>>, vector<1x128xf32>
    %c0_2 = arith.constant 0 : index
    %c0_3 = arith.constant 0 : index
    %6 = vector.load %arg10[%c0_2, %c0_3] : memref<1x128xf32, #tpu.memory_space<vmem>>, vector<1x128xf32>
    %c0_4 = arith.constant 0 : index
    %c0_5 = arith.constant 0 : index
    %7 = vector.load %arg11[%c0_4, %c0_5] : memref<1x128xf32, #tpu.memory_space<vmem>>, vector<1x128xf32>
    %c0_6 = arith.constant 0 : index
    %c0_7 = arith.constant 0 : index
    %8 = vector.load %arg12[%c0_6, %c0_7] : memref<1x128xf32, #tpu.memory_space<vmem>>, vector<1x128xf32>
    %c0_8 = arith.constant 0 : index
    %c0_9 = arith.constant 0 : index
    %9 = vector.load %arg0[%c0_8, %c0_9] : memref<32x1xf32, #tpu.memory_space<vmem>>, vector<32x1xf32>
    %10 = vector.broadcast %9 : vector<32x1xf32> to vector<32x128xf32>
    %11 = vector.broadcast %5 : vector<1x128xf32> to vector<32x128xf32>
    %12 = arith.mulf %10, %11 : vector<32x128xf32>
    %13 = vector.broadcast %8 : vector<1x128xf32> to vector<32x128xf32>
    %14 = arith.addf %13, %12 : vector<32x128xf32>
    %c0_10 = arith.constant 0 : index
    %c0_11 = arith.constant 0 : index
    %15 = vector.load %arg1[%c0_10, %c0_11] : memref<32x1xf32, #tpu.memory_space<vmem>>, vector<32x1xf32>
    %16 = vector.broadcast %15 : vector<32x1xf32> to vector<32x128xf32>
    %17 = vector.broadcast %6 : vector<1x128xf32> to vector<32x128xf32>
    %18 = arith.mulf %16, %17 : vector<32x128xf32>
    %19 = arith.addf %14, %18 : vector<32x128xf32>
    %c0_12 = arith.constant 0 : index
    %c0_13 = arith.constant 0 : index
    %20 = vector.load %arg2[%c0_12, %c0_13] : memref<32x1xf32, #tpu.memory_space<vmem>>, vector<32x1xf32>
    %21 = vector.broadcast %20 : vector<32x1xf32> to vector<32x128xf32>
    %22 = vector.broadcast %7 : vector<1x128xf32> to vector<32x128xf32>
    %23 = arith.mulf %21, %22 : vector<32x128xf32>
    %24 = arith.addf %19, %23 : vector<32x128xf32>
    %25 = math.tanh %24 : vector<32x128xf32>
    %c0_14 = arith.constant 0 : index
    %c0_15 = arith.constant 0 : index
    %26 = vector.load %arg4[%c0_14, %c0_15] : memref<32x1xf32, #tpu.memory_space<vmem>>, vector<32x1xf32>
    %27 = vector.broadcast %26 : vector<32x1xf32> to vector<32x128xf32>
    %28 = vector.broadcast %5 : vector<1x128xf32> to vector<32x128xf32>
    %29 = arith.mulf %27, %28 : vector<32x128xf32>
    %30 = vector.broadcast %8 : vector<1x128xf32> to vector<32x128xf32>
    %31 = arith.addf %30, %29 : vector<32x128xf32>
    %c0_16 = arith.constant 0 : index
    %c0_17 = arith.constant 0 : index
    %32 = vector.load %arg5[%c0_16, %c0_17] : memref<32x1xf32, #tpu.memory_space<vmem>>, vector<32x1xf32>
    %33 = vector.broadcast %32 : vector<32x1xf32> to vector<32x128xf32>
    %34 = vector.broadcast %6 : vector<1x128xf32> to vector<32x128xf32>
    %35 = arith.mulf %33, %34 : vector<32x128xf32>
    %36 = arith.addf %31, %35 : vector<32x128xf32>
    %c0_18 = arith.constant 0 : index
    %c0_19 = arith.constant 0 : index
    %37 = vector.load %arg6[%c0_18, %c0_19] : memref<32x1xf32, #tpu.memory_space<vmem>>, vector<32x1xf32>
    %38 = vector.broadcast %37 : vector<32x1xf32> to vector<32x128xf32>
    %39 = vector.broadcast %7 : vector<1x128xf32> to vector<32x128xf32>
    %40 = arith.mulf %38, %39 : vector<32x128xf32>
    %41 = arith.addf %36, %40 : vector<32x128xf32>
    %42 = math.tanh %41 : vector<32x128xf32>
    %43 = arith.mulf %42, %42 : vector<32x128xf32>
    %cst = arith.constant 1.000000e+00 : f32
    %44 = vector.broadcast %cst : f32 to vector<32x128xf32>
    %45 = arith.subf %44, %43 : vector<32x128xf32>
    %cst_20 = arith.constant -2.000000e+00 : f32
    %46 = vector.broadcast %cst_20 : f32 to vector<32x128xf32>
    %47 = arith.mulf %46, %42 : vector<32x128xf32>
    %48 = arith.mulf %47, %45 : vector<32x128xf32>
    %49 = tpu.concatenate %25, %42 in 0 : vector<32x128xf32>, vector<32x128xf32> -> vector<64x128xf32>
    %c0_21 = arith.constant 0 : index
    %c0_22 = arith.constant 0 : index
    %50 = vector.load %arg13[%c0_21, %c0_22] : memref<1x128xf32, #tpu.memory_space<vmem>>, vector<1x128xf32>
    %51 = vector.broadcast %50 : vector<1x128xf32> to vector<32x128xf32>
    %52 = arith.mulf %45, %51 : vector<32x128xf32>
    %c0_23 = arith.constant 0 : index
    %c0_24 = arith.constant 0 : index
    %53 = vector.load %arg14[%c0_23, %c0_24] : memref<1x128xf32, #tpu.memory_space<vmem>>, vector<1x128xf32>
    %54 = vector.broadcast %53 : vector<1x128xf32> to vector<32x128xf32>
    %55 = arith.mulf %45, %54 : vector<32x128xf32>
    %c0_25 = arith.constant 0 : index
    %c0_26 = arith.constant 0 : index
    %56 = vector.load %arg15[%c0_25, %c0_26] : memref<1x128xf32, #tpu.memory_space<vmem>>, vector<1x128xf32>
    %57 = vector.broadcast %56 : vector<1x128xf32> to vector<32x128xf32>
    %58 = arith.mulf %48, %57 : vector<32x128xf32>
    %59 = arith.addf %55, %58 : vector<32x128xf32>
    %c0_27 = arith.constant 0 : index
    %c0_28 = arith.constant 0 : index
    %60 = vector.load %arg16[%c0_27, %c0_28] : memref<1x128xf32, #tpu.memory_space<vmem>>, vector<1x128xf32>
    %61 = vector.broadcast %60 : vector<1x128xf32> to vector<32x128xf32>
    %62 = arith.mulf %48, %61 : vector<32x128xf32>
    %c0_29 = arith.constant 0 : index
    %c0_30 = arith.constant 0 : index
    %63 = vector.load %arg20[%c0_29, %c0_30] : memref<1x128xf32, #tpu.memory_space<vmem>>, vector<1x128xf32>
    %cst_31 = arith.constant 1.000000e+00 : f32
    %64 = vector.broadcast %cst_31 : f32 to vector<1x128xf32>
    %65 = arith.subf %64, %63 : vector<1x128xf32>
    %66 = tpu.concatenate %49, %52, %59, %62 in 0 : vector<64x128xf32>, vector<32x128xf32>, vector<32x128xf32>, vector<32x128xf32> -> vector<160x128xf32>
    %c0_32 = arith.constant 0 : index
    %c0_33 = arith.constant 0 : index
    %c0_34 = arith.constant 0 : index
    %67 = vector.load %arg17[%c0_32, %c0_33, %c0_34] : memref<3x128x128xf32, #tpu.memory_space<vmem>>, vector<1x128x128xf32>
    %68 = vector.shape_cast %67 : vector<1x128x128xf32> to vector<128x128xf32>
    %cst_35 = arith.constant dense<0.000000e+00> : vector<160x128xf32>
    %69 = tpu.matmul %66, %68, %cst_35 {dimension_numbers = #tpu.dot_dimension_numbers<[1], [0], [0], [1], [0, 0, 1, 1], [], []>} : vector<160x128xf32>, vector<128x128xf32>, vector<160x128xf32> -> vector<160x128xf32>
    %70 = vector.extract_strided_slice %69 {offsets = [0, 0], sizes = [64, 128], strides = [1, 1]} : vector<160x128xf32> to vector<64x128xf32>
    %71 = vector.extract_strided_slice %69 {offsets = [64, 0], sizes = [32, 128], strides = [1, 1]} : vector<160x128xf32> to vector<32x128xf32>
    %72 = vector.extract_strided_slice %69 {offsets = [96, 0], sizes = [32, 128], strides = [1, 1]} : vector<160x128xf32> to vector<32x128xf32>
    %73 = vector.extract_strided_slice %69 {offsets = [128, 0], sizes = [32, 128], strides = [1, 1]} : vector<160x128xf32> to vector<32x128xf32>
    %c0_36 = arith.constant 0 : index
    %c0_37 = arith.constant 0 : index
    %c0_38 = arith.constant 0 : index
    %74 = vector.load %arg18[%c0_36, %c0_37, %c0_38] : memref<3x1x128xf32, #tpu.memory_space<vmem>>, vector<1x1x128xf32>
    %75 = vector.shape_cast %74 : vector<1x1x128xf32> to vector<1x128xf32>
    %76 = vector.broadcast %75 : vector<1x128xf32> to vector<64x128xf32>
    %77 = arith.addf %70, %76 : vector<64x128xf32>
    %78 = math.tanh %77 : vector<64x128xf32>
    %79 = vector.extract_strided_slice %78 {offsets = [32, 0], sizes = [32, 128], strides = [1, 1]} : vector<64x128xf32> to vector<32x128xf32>
    %80 = arith.mulf %79, %79 : vector<32x128xf32>
    %cst_39 = arith.constant 1.000000e+00 : f32
    %81 = vector.broadcast %cst_39 : f32 to vector<32x128xf32>
    %82 = arith.subf %81, %80 : vector<32x128xf32>
    %cst_40 = arith.constant -2.000000e+00 : f32
    %83 = vector.broadcast %cst_40 : f32 to vector<32x128xf32>
    %84 = arith.mulf %83, %79 : vector<32x128xf32>
    %85 = arith.mulf %84, %82 : vector<32x128xf32>
    %86 = arith.mulf %85, %71 : vector<32x128xf32>
    %87 = arith.mulf %86, %71 : vector<32x128xf32>
    %c64_i32 = arith.constant 64 : i32
    %88 = tpu.dynamic_rotate %87 by %c64_i32 dim 1 : vector<32x128xf32>, i32 -> vector<32x128xf32>
    %89 = arith.mulf %82, %71 : vector<32x128xf32>
    %90 = arith.mulf %82, %72 : vector<32x128xf32>
    %91 = vector.broadcast %65 : vector<1x128xf32> to vector<32x128xf32>
    %92 = arith.mulf %88, %91 : vector<32x128xf32>
    %93 = arith.addf %90, %92 : vector<32x128xf32>
    %94 = arith.mulf %82, %73 : vector<32x128xf32>
    %95 = vector.broadcast %63 : vector<1x128xf32> to vector<32x128xf32>
    %96 = arith.mulf %88, %95 : vector<32x128xf32>
    %97 = arith.addf %94, %96 : vector<32x128xf32>
    %98 = tpu.concatenate %78, %89, %93, %97 in 0 : vector<64x128xf32>, vector<32x128xf32>, vector<32x128xf32>, vector<32x128xf32> -> vector<160x128xf32>
    %c1_41 = arith.constant 1 : index
    %c0_42 = arith.constant 0 : index
    %c0_43 = arith.constant 0 : index
    %99 = vector.load %arg17[%c1_41, %c0_42, %c0_43] : memref<3x128x128xf32, #tpu.memory_space<vmem>>, vector<1x128x128xf32>
    %100 = vector.shape_cast %99 : vector<1x128x128xf32> to vector<128x128xf32>
    %cst_44 = arith.constant dense<0.000000e+00> : vector<160x128xf32>
    %101 = tpu.matmul %98, %100, %cst_44 {dimension_numbers = #tpu.dot_dimension_numbers<[1], [0], [0], [1], [0, 0, 1, 1], [], []>} : vector<160x128xf32>, vector<128x128xf32>, vector<160x128xf32> -> vector<160x128xf32>
    %102 = vector.extract_strided_slice %101 {offsets = [0, 0], sizes = [64, 128], strides = [1, 1]} : vector<160x128xf32> to vector<64x128xf32>
    %103 = vector.extract_strided_slice %101 {offsets = [64, 0], sizes = [32, 128], strides = [1, 1]} : vector<160x128xf32> to vector<32x128xf32>
    %104 = vector.extract_strided_slice %101 {offsets = [96, 0], sizes = [32, 128], strides = [1, 1]} : vector<160x128xf32> to vector<32x128xf32>
    %105 = vector.extract_strided_slice %101 {offsets = [128, 0], sizes = [32, 128], strides = [1, 1]} : vector<160x128xf32> to vector<32x128xf32>
    %c1_45 = arith.constant 1 : index
    %c0_46 = arith.constant 0 : index
    %c0_47 = arith.constant 0 : index
    %106 = vector.load %arg18[%c1_45, %c0_46, %c0_47] : memref<3x1x128xf32, #tpu.memory_space<vmem>>, vector<1x1x128xf32>
    %107 = vector.shape_cast %106 : vector<1x1x128xf32> to vector<1x128xf32>
    %108 = vector.broadcast %107 : vector<1x128xf32> to vector<64x128xf32>
    %109 = arith.addf %102, %108 : vector<64x128xf32>
    %110 = math.tanh %109 : vector<64x128xf32>
    %111 = vector.extract_strided_slice %110 {offsets = [32, 0], sizes = [32, 128], strides = [1, 1]} : vector<64x128xf32> to vector<32x128xf32>
    %112 = arith.mulf %111, %111 : vector<32x128xf32>
    %cst_48 = arith.constant 1.000000e+00 : f32
    %113 = vector.broadcast %cst_48 : f32 to vector<32x128xf32>
    %114 = arith.subf %113, %112 : vector<32x128xf32>
    %cst_49 = arith.constant -2.000000e+00 : f32
    %115 = vector.broadcast %cst_49 : f32 to vector<32x128xf32>
    %116 = arith.mulf %115, %111 : vector<32x128xf32>
    %117 = arith.mulf %116, %114 : vector<32x128xf32>
    %118 = arith.mulf %117, %103 : vector<32x128xf32>
    %119 = arith.mulf %118, %103 : vector<32x128xf32>
    %c64_i32_50 = arith.constant 64 : i32
    %120 = tpu.dynamic_rotate %119 by %c64_i32_50 dim 1 : vector<32x128xf32>, i32 -> vector<32x128xf32>
    %121 = arith.mulf %114, %103 : vector<32x128xf32>
    %122 = arith.mulf %114, %104 : vector<32x128xf32>
    %123 = vector.broadcast %65 : vector<1x128xf32> to vector<32x128xf32>
    %124 = arith.mulf %120, %123 : vector<32x128xf32>
    %125 = arith.addf %122, %124 : vector<32x128xf32>
    %126 = arith.mulf %114, %105 : vector<32x128xf32>
    %127 = vector.broadcast %63 : vector<1x128xf32> to vector<32x128xf32>
    %128 = arith.mulf %120, %127 : vector<32x128xf32>
    %129 = arith.addf %126, %128 : vector<32x128xf32>
    %130 = tpu.concatenate %110, %121, %125, %129 in 0 : vector<64x128xf32>, vector<32x128xf32>, vector<32x128xf32>, vector<32x128xf32> -> vector<160x128xf32>
    %c2_51 = arith.constant 2 : index
    %c0_52 = arith.constant 0 : index
    %c0_53 = arith.constant 0 : index
    %131 = vector.load %arg17[%c2_51, %c0_52, %c0_53] : memref<3x128x128xf32, #tpu.memory_space<vmem>>, vector<1x128x128xf32>
    %132 = vector.shape_cast %131 : vector<1x128x128xf32> to vector<128x128xf32>
    %cst_54 = arith.constant dense<0.000000e+00> : vector<160x128xf32>
    %133 = tpu.matmul %130, %132, %cst_54 {dimension_numbers = #tpu.dot_dimension_numbers<[1], [0], [0], [1], [0, 0, 1, 1], [], []>} : vector<160x128xf32>, vector<128x128xf32>, vector<160x128xf32> -> vector<160x128xf32>
    %134 = vector.extract_strided_slice %133 {offsets = [0, 0], sizes = [64, 128], strides = [1, 1]} : vector<160x128xf32> to vector<64x128xf32>
    %135 = vector.extract_strided_slice %133 {offsets = [64, 0], sizes = [32, 128], strides = [1, 1]} : vector<160x128xf32> to vector<32x128xf32>
    %136 = vector.extract_strided_slice %133 {offsets = [96, 0], sizes = [32, 128], strides = [1, 1]} : vector<160x128xf32> to vector<32x128xf32>
    %137 = vector.extract_strided_slice %133 {offsets = [128, 0], sizes = [32, 128], strides = [1, 1]} : vector<160x128xf32> to vector<32x128xf32>
    %c2_55 = arith.constant 2 : index
    %c0_56 = arith.constant 0 : index
    %c0_57 = arith.constant 0 : index
    %138 = vector.load %arg18[%c2_55, %c0_56, %c0_57] : memref<3x1x128xf32, #tpu.memory_space<vmem>>, vector<1x1x128xf32>
    %139 = vector.shape_cast %138 : vector<1x1x128xf32> to vector<1x128xf32>
    %140 = vector.broadcast %139 : vector<1x128xf32> to vector<64x128xf32>
    %141 = arith.addf %134, %140 : vector<64x128xf32>
    %142 = math.tanh %141 : vector<64x128xf32>
    %143 = vector.extract_strided_slice %142 {offsets = [32, 0], sizes = [32, 128], strides = [1, 1]} : vector<64x128xf32> to vector<32x128xf32>
    %144 = arith.mulf %143, %143 : vector<32x128xf32>
    %cst_58 = arith.constant 1.000000e+00 : f32
    %145 = vector.broadcast %cst_58 : f32 to vector<32x128xf32>
    %146 = arith.subf %145, %144 : vector<32x128xf32>
    %cst_59 = arith.constant -2.000000e+00 : f32
    %147 = vector.broadcast %cst_59 : f32 to vector<32x128xf32>
    %148 = arith.mulf %147, %143 : vector<32x128xf32>
    %149 = arith.mulf %148, %146 : vector<32x128xf32>
    %150 = arith.mulf %149, %135 : vector<32x128xf32>
    %151 = arith.mulf %150, %135 : vector<32x128xf32>
    %c64_i32_60 = arith.constant 64 : i32
    %152 = tpu.dynamic_rotate %151 by %c64_i32_60 dim 1 : vector<32x128xf32>, i32 -> vector<32x128xf32>
    %153 = arith.mulf %146, %136 : vector<32x128xf32>
    %154 = vector.broadcast %65 : vector<1x128xf32> to vector<32x128xf32>
    %155 = arith.mulf %152, %154 : vector<32x128xf32>
    %156 = arith.addf %153, %155 : vector<32x128xf32>
    %157 = arith.mulf %146, %137 : vector<32x128xf32>
    %158 = vector.broadcast %63 : vector<1x128xf32> to vector<32x128xf32>
    %159 = arith.mulf %152, %158 : vector<32x128xf32>
    %160 = arith.addf %157, %159 : vector<32x128xf32>
    %c0_61 = arith.constant 0 : index
    %c0_62 = arith.constant 0 : index
    %161 = vector.load %arg19[%c0_61, %c0_62] : memref<1x128xf32, #tpu.memory_space<vmem>>, vector<1x128xf32>
    %162 = vector.extract_strided_slice %142 {offsets = [0, 0], sizes = [32, 128], strides = [1, 1]} : vector<64x128xf32> to vector<32x128xf32>
    %163 = vector.broadcast %161 : vector<1x128xf32> to vector<32x128xf32>
    %164 = arith.mulf %162, %163 : vector<32x128xf32>
    %cst_63 = arith.constant dense<0.000000e+00> : vector<32xf32>
    %165 = vector.multi_reduction <add>, %164, %cst_63 [1] : vector<32x128xf32> to vector<32xf32>
    %166 = vector.shape_cast %165 : vector<32xf32> to vector<32x1xf32>
    %167 = vector.broadcast %2 : f32 to vector<32x1xf32>
    %168 = arith.addf %166, %167 : vector<32x1xf32>
    %c0_64 = arith.constant 0 : index
    %c0_65 = arith.constant 0 : index
    %169 = vector.load %arg3[%c0_64, %c0_65] : memref<32x1xf32, #tpu.memory_space<vmem>>, vector<32x1xf32>
    %170 = arith.subf %168, %169 : vector<32x1xf32>
    %171 = arith.mulf %170, %170 : vector<32x1xf32>
    %c0_66 = arith.constant 0 : index
    %c0_67 = arith.constant 0 : index
    %172 = vector.load %arg7[%c0_66, %c0_67] : memref<32x1xf32, #tpu.memory_space<vmem>>, vector<32x1xf32>
    %173 = arith.mulf %171, %172 : vector<32x1xf32>
    %cst_68 = arith.constant dense<0.000000e+00> : vector<1xf32>
    %174 = vector.multi_reduction <add>, %173, %cst_68 [0] : vector<32x1xf32> to vector<1xf32>
    %175 = vector.shape_cast %174 : vector<1xf32> to vector<1x1xf32>
    %176 = vector.broadcast %3 : f32 to vector<1x1xf32>
    %177 = arith.mulf %175, %176 : vector<1x1xf32>
    %c64_i32_69 = arith.constant 64 : i32
    %178 = tpu.dynamic_rotate %156 by %c64_i32_69 dim 1 : vector<32x128xf32>, i32 -> vector<32x128xf32>
    %179 = arith.addf %178, %160 : vector<32x128xf32>
    %180 = vector.broadcast %0 : f32 to vector<32x128xf32>
    %181 = arith.mulf %180, %179 : vector<32x128xf32>
    %182 = arith.subf %156, %181 : vector<32x128xf32>
    %183 = vector.broadcast %161 : vector<1x128xf32> to vector<32x128xf32>
    %184 = arith.mulf %182, %183 : vector<32x128xf32>
    %cst_70 = arith.constant dense<0.000000e+00> : vector<32xf32>
    %185 = vector.multi_reduction <add>, %184, %cst_70 [1] : vector<32x128xf32> to vector<32xf32>
    %186 = vector.shape_cast %185 : vector<32xf32> to vector<32x1xf32>
    %187 = arith.mulf %186, %186 : vector<32x1xf32>
    %c0_71 = arith.constant 0 : index
    %c0_72 = arith.constant 0 : index
    %188 = vector.load %arg8[%c0_71, %c0_72] : memref<32x1xf32, #tpu.memory_space<vmem>>, vector<32x1xf32>
    %189 = arith.mulf %187, %188 : vector<32x1xf32>
    %cst_73 = arith.constant dense<0.000000e+00> : vector<1xf32>
    %190 = vector.multi_reduction <add>, %189, %cst_73 [0] : vector<32x1xf32> to vector<1xf32>
    %191 = vector.shape_cast %190 : vector<1xf32> to vector<1x1xf32>
    %192 = vector.broadcast %4 : f32 to vector<1x1xf32>
    %193 = arith.mulf %191, %192 : vector<1x1xf32>
    %194 = vector.broadcast %1 : f32 to vector<1x1xf32>
    %195 = arith.mulf %194, %193 : vector<1x1xf32>
    %196 = arith.addf %177, %195 : vector<1x1xf32>
    %197 = tpu.iota {dimensions = array<i32: 1>} : vector<1x128xi32>
    %c0_i32 = arith.constant 0 : i32
    %198 = vector.broadcast %c0_i32 : i32 to vector<1x128xi32>
    %199 = arith.cmpi eq, %197, %198 : vector<1x128xi32>
    %cst_74 = arith.constant 0.000000e+00 : f32
    %200 = vector.shape_cast %196 : vector<1x1xf32> to vector<1x1xf32>
    %201 = vector.broadcast %200 : vector<1x1xf32> to vector<1x128xf32>
    %202 = vector.broadcast %cst_74 : f32 to vector<1x128xf32>
    %203 = arith.select %199, %201, %202 : vector<1x128xi1>, vector<1x128xf32>
    %c1_i32 = arith.constant 1 : i32
    %204 = vector.broadcast %c1_i32 : i32 to vector<1x128xi32>
    %205 = arith.cmpi eq, %197, %204 : vector<1x128xi32>
    %cst_75 = arith.constant 0.000000e+00 : f32
    %206 = vector.shape_cast %177 : vector<1x1xf32> to vector<1x1xf32>
    %207 = vector.broadcast %206 : vector<1x1xf32> to vector<1x128xf32>
    %208 = vector.broadcast %cst_75 : f32 to vector<1x128xf32>
    %209 = arith.select %205, %207, %208 : vector<1x128xi1>, vector<1x128xf32>
    %210 = arith.addf %203, %209 : vector<1x128xf32>
    %c2_i32 = arith.constant 2 : i32
    %211 = vector.broadcast %c2_i32 : i32 to vector<1x128xi32>
    %212 = arith.cmpi eq, %197, %211 : vector<1x128xi32>
    %cst_76 = arith.constant 0.000000e+00 : f32
    %213 = vector.shape_cast %193 : vector<1x1xf32> to vector<1x1xf32>
    %214 = vector.broadcast %213 : vector<1x1xf32> to vector<1x128xf32>
    %215 = vector.broadcast %cst_76 : f32 to vector<1x128xf32>
    %216 = arith.select %212, %214, %215 : vector<1x128xi1>, vector<1x128xf32>
    %217 = arith.addf %210, %216 : vector<1x128xf32>
    %c0_77 = arith.constant 0 : index
    %c0_78 = arith.constant 0 : index
    %218 = vector.load %arg22[%c0_77, %c0_78] : memref<1x128xf32, #tpu.memory_space<vmem>>, vector<1x128xf32>
    tpu.vector_store %arg22[%c0_77, %c0_78], %217 {strides = array<i32>} : memref<1x128xf32, #tpu.memory_space<vmem>>, vector<1x128xf32>,
    return
  }
}

</mosaic_0001>

<bundles_post_ra>
// kernel: pinn_loss_pallas.1
= control target key start
LH: loop header
LB: loop body
LE: loop exit
PB: predicated region body
PF: predicated region fallthrough
CT: control target
= control target key end

     0   :  { %s2441_s0 = inlined_call_operand.vmem [shape: f32[32,1], index: 0, kind: input, shape index: {}]   ;;  %s2442_s1 = inlined_call_operand.vmem [shape: f32[32,1], index: 1, kind: input, shape index: {}]   ;;  %s2443_s2 = inlined_call_operand.vmem [shape: f32[32,1], index: 2, kind: input, shape index: {}]   ;;  %s2444_s3 = inlined_call_operand.vmem [shape: f32[32,1], index: 3, kind: input, shape index: {}]   ;;  %s2445_s4 = inlined_call_operand.vmem [shape: f32[32,1], index: 4, kind: input, shape index: {}]   ;;  %s2446_s5 = inlined_call_operand.vmem [shape: f32[32,1], index: 5, kind: input, shape index: {}]   ;;  %s2447_s6 = inlined_call_operand.vmem [shape: f32[32,1], index: 6, kind: input, shape index: {}]   ;;  %s2448_s7 = inlined_call_operand.vmem [shape: f32[32,1], index: 7, kind: input, shape index: {}, may-alias: {7,8}]   ;;  %s2449_s8 = inlined_call_operand.vmem [shape: f32[32,1], index: 8, kind: input, shape index: {}, may-alias: {7,8}]   ;;  %s2450_s9 = inlined_call_operand.vmem [shape: f32[1,128], index: 9, kind: input, shape index: {}]   ;;  %s2451_s10 = inlined_call_operand.vmem [shape: f32[1,128], index: 10, kind: input, shape index: {}]   ;;  %s2452_s11 = inlined_call_operand.vmem [shape: f32[1,128], index: 11, kind: input, shape index: {}]   ;;  %s2453_s12 = inlined_call_operand.vmem [shape: f32[1,128], index: 12, kind: input, shape index: {}]   ;;  %s2454_s13 = inlined_call_operand.vmem [shape: f32[1,128], index: 13, kind: input, shape index: {}]   ;;  %s2455_s14 = inlined_call_operand.vmem [shape: f32[1,128], index: 14, kind: input, shape index: {}]   ;;  %s2456_s15 = inlined_call_operand.vmem [shape: f32[1,128], index: 15, kind: input, shape index: {}]   ;;  %s2457_s16 = inlined_call_operand.vmem [shape: f32[1,128], index: 16, kind: input, shape index: {}]   ;;  %s2458_s17 = inlined_call_operand.vmem [shape: f32[3,128,128], index: 17, kind: input, shape index: {}]   ;;  %s2459_s18 = inlined_call_operand.vmem [shape: f32[3,1,128], index: 18, kind: input, shape index: {}]   ;;  %s2460_s19 = inlined_call_operand.vmem [shape: f32[1,128], index: 19, kind: input, shape index: {}]   ;;  %s2461_s20 = inlined_call_operand.vmem [shape: f32[1,128], index: 20, kind: input, shape index: {}]   ;;  %s2462_s21 = inlined_call_operand.vmem [shape: f32[5], index: 21, kind: input, shape index: {}]   ;;  %s2463_s22 = inlined_call_operand.vmem [shape: f32[1,128], index: 22, kind: output, shape index: {}]  }
   0x1   :  { %2471 = sst [smem:[#allocation5_spill]] %s2441_s0 }
   0x2   :  { %2472 = sst [smem:[#allocation6_spill]] %s2442_s1 }
   0x3   :  { %2473 = sst [smem:[#allocation7_spill]] %s2443_s2 }
   0x4   :  { %2474 = sst [smem:[#allocation8_spill]] %s2444_s3 }
   0x5   :  { %2475 = sst [smem:[#allocation9_spill]] %s2445_s4 }
   0x6   :  { %2476 = sst [smem:[#allocation10_spill]] %s2446_s5 }
   0x7   :  { %2477 = sst [smem:[#allocation11_spill]] %s2447_s6 }
   0x8   :  { %27 = vsyncpa [#allocation3], 0  ;;  %s76_s29 = sshll.u32 %s2462_s21, 4  ;;  %s77_s29 = int_to_ptr.vmem [resolvable:$true] %s76_s29 }
   0x9   :  { %s1866_s30 = scalar_lea.vmem %s77_s29, 16  ;;  %p1871_p1 = scmp.lt.s32.totalorder %s77_s29, %s77_s29 }
   0xa   :  { %p1867_p0 = scmp.ne.s32.totalorder %s77_s29, %s1866_s30  ;;  %p1872_p2 = scmp.lt.s32.totalorder %s1866_s30, %s1866_s30 }
   0xc   :  { %p1873_p3 = por %p1872_p2, %p1871_p1 }
   0xe   :  { %p1874_p4 = pnand %p1873_p3, %p1867_p0 }
  0x10   :  { %1877 = shalt.err (!%p1874_p4)
}
  0x11   :  { %s1880_s4 = smov [#allocation2]  }
  0x12   :  { %79 = dma.vmem_to_smem %s77_s29, 16, %s1880_s4, [#allocation3]  }
  0x13   :  { %1878 = dma.done.wait [#allocation3], 16  }
  0x14   :  { %1879 = vsyncadd [#allocation3], 4294967280 }
  0x15   :  { %83 = sfence }
  0x16   :  { %s2478_s1 = sld [smem:[#allocation6_spill]]  ;;  %s2479_s21 = sld [smem:[#allocation5_spill]]  ;;  %v1881_v2 = vmov 0   ;;  %v383_v7 = vld [vmem:[%s2458_s17] sm:$0xff]  ;;  %v384_v8 = vld [vmem:[%s2458_s17 + $0x8] sm:$0xff]  ;;  %v385_v9 = vld [vmem:[%s2458_s17 + $0x10] sm:$0xff] }
  0x17   :  { %1801 = vset.pattern.permute.xlu1 %v1881_v2  ;;  %1800 = vset.pattern.permute.xlu0 %v1881_v2  ;;  %s2480_s28 = sld [smem:[#allocation7_spill]]  ;;  %v1685_v10 = vpack.c.bf16 %v384_v8, %v383_v7  ;;  %v386_v11 = vld [vmem:[%s2458_s17 + $0x18] sm:$0xff]  ;;  %v387_v13 = vld [vmem:[%s2458_s17 + $0x20] sm:$0xff]  ;;  %v388_v14 = vld [vmem:[%s2458_s17 + $0x28] sm:$0xff]  ;;  %s2481_s5 = sld [smem:[#allocation9_spill]]  ;;  %vm1231_vm0 = vcmask 7168  }
  0x18   :  { %v1689_v12 = vpack.c.bf16 %v386_v11, %v385_v9  ;;  %v1693_v17 = vpack.c.bf16 %v388_v14, %v387_v13  ;;  %v389_v18 = vld [vmem:[%s2458_s17 + $0x30] sm:$0xff]  ;;  %v390_v19 = vld [vmem:[%s2458_s17 + $0x38] sm:$0xff]  ;;  %v391_v23 = vld [vmem:[%s2458_s17 + $0x40] sm:$0xff]  ;;  %s2483_s30 = sld [smem:[#allocation11_spill]]  ;;  %s2484_s24 = sld [smem:[#allocation8_spill]] }
  0x19   :  { %1686 = vmatprep.subr.bf16.mxu0 %v1685_v10  ;;  %v1697_v22 = vpack.c.bf16 %v390_v19, %v389_v18  ;;  %v392_v24 = vld [vmem:[%s2458_s17 + $0x48] sm:$0xff]  ;;  %v393_v28 = vld [vmem:[%s2458_s17 + $0x50] sm:$0xff]  ;;  %v394_v29 = vld [vmem:[%s2458_s17 + $0x58] sm:$0xff]  ;;  %s1344_s4 = sld [smem:[#allocation2 + $0x4]] }
  0x1a   :  { %1688 = vmatpush3.bf16.msra.mxu0 %v1685_v10  ;;  %v1701_v27 = vpack.c.bf16 %v392_v24, %v391_v23  ;;  %v1705_v32 = vpack.c.bf16 %v394_v29, %v393_v28  ;;  %v395_v33 = vld [vmem:[%s2458_s17 + $0x60] sm:$0xff]  ;;  %v396_v34 = vld [vmem:[%s2458_s17 + $0x68] sm:$0xff]  ;;  %v397_v38 = vld [vmem:[%s2458_s17 + $0x70] sm:$0xff] }
  0x1b   :  { %1690 = vmatprep.subr.bf16.mxu0 %v1689_v12  ;;  %v1709_v37 = vpack.c.bf16 %v396_v34, %v395_v33  ;;  %v398_v39 = vld [vmem:[%s2458_s17 + $0x78] sm:$0xff]  ;;  %v1354_v49 = vld [vmem:[%s2458_s17 + $0x80] sm:$0xff]  ;;  %v1355_v50 = vld [vmem:[%s2458_s17 + $0x88] sm:$0xff] }
  0x1c   :  { %v137_v0 = vld [vmem:[%s2478_s1] sm:$0xff]  ;;  %v138_v3 = vld [vmem:[%s2478_s1 + $0x8] sm:$0xff]  ;;  %v95_v6 = vld [vmem:[%s2479_s21 + $0x10] sm:$0xff]  ;;  %v1713_v42 = vpack.c.bf16 %v398_v39, %v397_v38  ;;  %v1717_v52 = vpack.c.bf16 %v1355_v50, %v1354_v49 }
  0x1d   :  { %v93_v1 = vld [vmem:[%s2479_s21] sm:$0xff]  ;;  %143 = vperm.xlu1 %1801, %v137_v0   ;;  %v94_v4 = vld [vmem:[%s2479_s21 + $0x8] sm:$0xff]  ;;  %v96_v16 = vld [vmem:[%s2479_s21 + $0x18] sm:$0xff]  ;;  %s1343_s21 = sld [smem:[#allocation2 + $0x3]] }
  0x1e   :  { %99 = vperm.xlu0 %1800, %v93_v1   ;;  %v175_v5 = vld [vmem:[%s2480_s28] sm:$0xff]  ;;  %v176_v15 = vld [vmem:[%s2480_s28 + $0x8] sm:$0xff]  ;;  %v140_v20 = vld [vmem:[%s2478_s1 + $0x18] sm:$0xff]  ;;  %1692 = vmatpush3.bf16.msra.mxu0 %v1689_v12 }
  0x1f   :  { %v139_v21 = vld [vmem:[%s2478_s1 + $0x10] sm:$0xff]  ;;  %1694 = vmatprep.subr.bf16.mxu0 %v1693_v17  ;;  %v217_v25 = vld [vmem:[%s2481_s5] sm:$0xff]  ;;  %v218_v30 = vld [vmem:[%s2481_s5 + $0x8] sm:$0xff]  ;;  %s2482_s1 = sld [smem:[#allocation10_spill]]  ;;  %1718 = vmatprep.subr.bf16.mxu1 %v1717_v52 }
  0x20   :  { %v177_v26 = vld [vmem:[%s2480_s28 + $0x10] sm:$0xff]  ;;  %v178_v31 = vld [vmem:[%s2480_s28 + $0x18] sm:$0xff]  ;;  %v281_v40 = vld [vmem:[%s2483_s30] sm:$0xff]  ;;  %1720 = vmatpush3.bf16.msra.mxu1 %v1717_v52 }
  0x21   :  { %148 = vperm.xlu1 %1801, %v138_v3   ;;  %v219_v41 = vld [vmem:[%s2481_s5 + $0x10] sm:$0xff]  ;;  %v282_v43 = vld [vmem:[%s2483_s30 + $0x8] sm:$0xff]  ;;  %v220_v44 = vld [vmem:[%s2481_s5 + $0x18] sm:$0xff] }
  0x22   :  { %104 = vperm.xlu0 %1800, %v94_v4   ;;  %1696 = vmatpush3.bf16.msra.mxu0 %v1693_v17  ;;  %v284_v47 = vld [vmem:[%s2483_s30 + $0x18] sm:$0xff]  ;;  %v283_v48 = vld [vmem:[%s2483_s30 + $0x10] sm:$0xff]  ;;  %v1358_v55 = vld [vmem:[%s2458_s17 + $0xa0] sm:$0xff] }
  0x23   :  { %1698 = vmatprep.subr.bf16.mxu0 %v1697_v22  ;;  %v1356_v51 = vld [vmem:[%s2458_s17 + $0x90] sm:$0xff]  ;;  %v1357_v53 = vld [vmem:[%s2458_s17 + $0x98] sm:$0xff]  ;;  %v1359_v56 = vld [vmem:[%s2458_s17 + $0xa8] sm:$0xff] }
  0x24   :  { %v1721_v54 = vpack.c.bf16 %v1357_v53, %v1356_v51  ;;  %v1725_v57 = vpack.c.bf16 %v1359_v56, %v1358_v55  ;;  %v1360_v58 = vld [vmem:[%s2458_s17 + $0xb0] sm:$0xff]  ;;  %v1361_v59 = vld [vmem:[%s2458_s17 + $0xb8] sm:$0xff]  ;;  %v2148_v61 = vld [vmem:[%s2450_s9] ss:$0 sm:$0xff] }
  0x25   :  { %181 = vperm.xlu1 %1801, %v175_v5   ;;  %v250_v35 = vld [vmem:[%s2482_s1 + $0x8] sm:$0xff]  ;;  %v249_v36 = vld [vmem:[%s2482_s1] sm:$0xff]  ;;  %v252_v45 = vld [vmem:[%s2482_s1 + $0x18] sm:$0xff]  ;;  %v1729_v60 = vpack.c.bf16 %v1361_v59, %v1360_v58 }
  0x26   :  { %109 = vperm.xlu0 %1800, %v95_v6   ;;  %1700 = vmatpush3.bf16.msra.mxu0 %v1697_v22  ;;  %v251_v46 = vld [vmem:[%s2482_s1 + $0x10] sm:$0xff]  ;;  %v2154_v1 = vld [vmem:[%s2451_s10] ss:$0 sm:$0xff] }
  0x27   :  { %1702 = vmatprep.subr.bf16.mxu0 %v1701_v27  ;;  %1722 = vmatprep.subr.bf16.mxu1 %v1721_v54  ;;  %v2159_v2 = vld [vmem:[%s2453_s12] ss:$0 sm:$0xff]  ;;  %s1882_s12 = smov 64  }
  0x28   :  { %1724 = vmatpush3.bf16.msra.mxu1 %v1721_v54  ;;  %v2167_v8 = vld [vmem:[%s2452_s11] ss:$0 sm:$0xff] }
  0x29   :  { %186 = vperm.xlu1 %1801, %v176_v15   ;;  %1726 = vmatprep.subr.bf16.mxu1 %v1725_v57 }
  0x2a   :  { %114 = vperm.xlu0 %1800, %v96_v16   ;;  %1704 = vmatpush3.bf16.msra.mxu0 %v1701_v27 }
  0x2b   :  { %1706 = vmatprep.subr.bf16.mxu0 %v1705_v32 }
  0x2c   :  { %1728 = vmatpush3.bf16.msra.mxu1 %v1725_v57 }
  0x2d   :  { %158 = vperm.xlu1 %1801, %v140_v20   ;;  %1730 = vmatprep.subr.bf16.mxu1 %v1729_v60 }
  0x2e   :  { %153 = vperm.xlu0 %1800, %v139_v21   ;;  %1708 = vmatpush3.bf16.msra.mxu0 %v1705_v32 }
  0x2f   :  { %1710 = vmatprep.subr.bf16.mxu0 %v1709_v37 }
  0x30   :  { %1732 = vmatpush3.bf16.msra.mxu1 %v1729_v60 }
  0x31   :  { %223 = vperm.xlu1 %1801, %v217_v25  }
  0x32   :  { %191 = vperm.xlu0 %1800, %v177_v26   ;;  %1712 = vmatpush3.bf16.msra.mxu0 %v1709_v37 }
  0x33   :  { %1714 = vmatprep.subr.bf16.mxu0 %v1713_v42 }
  0x35   :  { %228 = vperm.xlu1 %1801, %v218_v30  }
  0x36   :  { %196 = vperm.xlu0 %1800, %v178_v31   ;;  %1716 = vmatpush3.bf16.msra.mxu0 %v1713_v42 }
  0x39   :  { %260 = vperm.xlu1 %1801, %v250_v35  }
  0x3a   :  { %255 = vperm.xlu0 %1800, %v249_v36  }
  0x3d   :  { %287 = vperm.xlu1 %1801, %v281_v40  }
  0x3e   :  { %233 = vperm.xlu0 %1800, %v219_v41  }
  0x41   :  { %292 = vperm.xlu1 %1801, %v282_v43  }
  0x42   :  { %238 = vperm.xlu0 %1800, %v220_v44  }
  0x45   :  { %270 = vperm.xlu1 %1801, %v252_v45  }
  0x46   :  { %265 = vperm.xlu0 %1800, %v251_v46  }
  0x49   :  { %302 = vperm.xlu1 %1801, %v284_v47  }
  0x4a   :  { %297 = vperm.xlu0 %1800, %v283_v48  }
  0x9c   :  { %v144_v62 = vpop.permute.xlu1 %143 }
  0x9d   :  { %v100_v63 = vpop.permute.xlu0 %99  ;;  %v167_v5 = vmul.f32 %v2154_v1, %v144_v62 }
  0x9e   :  { %v123_v0 = vmul.f32 %v2148_v61, %v100_v63 }
  0xa0   :  { %v149_v3 = vpop.permute.xlu1 %148  ;;  %v133_v6 = vadd.f32 %v2159_v2, %v123_v0 }
  0xa1   :  { %v105_v4 = vpop.permute.xlu0 %104  ;;  %v168_v14 = vmul.f32 %v2154_v1, %v149_v3 }
  0xa2   :  { %v124_v7 = vmul.f32 %v2148_v61, %v105_v4  ;;  %v171_v12 = vadd.f32 %v167_v5, %v133_v6 }
  0xa4   :  { %v182_v9 = vpop.permute.xlu1 %181  ;;  %v134_v11 = vadd.f32 %v2159_v2, %v124_v7 }
  0xa5   :  { %v110_v10 = vpop.permute.xlu0 %109  ;;  %v205_v13 = vmul.f32 %v2167_v8, %v182_v9 }
  0xa6   :  { %v172_v18 = vadd.f32 %v168_v14, %v134_v11  ;;  %v125_v20 = vmul.f32 %v2148_v61, %v110_v10 }
  0xa7   :  { %v209_v15 = vadd.f32 %v205_v13, %v171_v12 }
  0xa8   :  { %v187_v16 = vpop.permute.xlu1 %186  ;;  %v135_v25 = vadd.f32 %v2159_v2, %v125_v20 }
  0xa9   :  { %v115_v17 = vpop.permute.xlu0 %114  ;;  %v206_v19 = vmul.f32 %v2167_v8, %v187_v16  ;;  %1802 = vtanh.f32 %v209_v15 }
  0xaa   :  { %v126_v26 = vmul.f32 %v2148_v61, %v115_v17 }
  0xab   :  { %v210_v21 = vadd.f32 %v206_v19, %v172_v18 }
  0xac   :  { %v159_v22 = vpop.permute.xlu1 %158  ;;  %v136_v33 = vadd.f32 %v2159_v2, %v126_v26 }
  0xad   :  { %v154_v23 = vpop.permute.xlu0 %153  ;;  %1804 = vtanh.f32 %v210_v21  ;;  %v170_v29 = vmul.f32 %v2154_v1, %v159_v22 }
  0xae   :  { %v169_v24 = vmul.f32 %v2154_v1, %v154_v23 }
  0xaf   :  { %v174_v37 = vadd.f32 %v170_v29, %v136_v33  ;;  %v1350_v33 = vld [vmem:[%s2455_s14] ss:$0 sm:$0xff] }
  0xb0   :  { %v224_v27 = vpop.permute.xlu1 %223  ;;  %v173_v30 = vadd.f32 %v169_v24, %v135_v25 }
  0xb1   :  { %v192_v28 = vpop.permute.xlu0 %191  ;;  %v241_v40 = vmul.f32 %v2148_v61, %v224_v27  ;;  %v1351_v27 = vld [vmem:[%s2456_s15] ss:$0 sm:$0xff] }
  0xb2   :  { %v207_v31 = vmul.f32 %v2167_v8, %v192_v28 }
  0xb3   :  { %v1803_v32 = vpop.eup %1802  ;;  %v245_v45 = vadd.f32 %v2159_v2, %v241_v40 }
  0xb4   :  { %v211_v34 = vadd.f32 %v207_v31, %v173_v30  ;;  %v229_v35 = vpop.permute.xlu1 %228  ;;  %1531 = vmatprep.mubr.f32.mxu0 %v1803_v32 }
  0xb5   :  { %v197_v36 = vpop.permute.xlu0 %196  ;;  %v242_v46 = vmul.f32 %v2148_v61, %v229_v35 }
  0xb6   :  { %1806 = vtanh.f32 %v211_v34  ;;  %v208_v38 = vmul.f32 %v2167_v8, %v197_v36 }
  0xb7   :  { %v1805_v39 = vpop.eup %1804  ;;  %v246_v53 = vadd.f32 %v2159_v2, %v242_v46 }
  0xb8   :  { %v212_v41 = vadd.f32 %v208_v38, %v174_v37  ;;  %v261_v42 = vpop.permute.xlu1 %260  ;;  %1532 = vmatmul.mubr.f32.vlgmr.msra.gmra.mrb[0].mxu0 %v1805_v39 }
  0xb9   :  { %v256_v43 = vpop.permute.xlu0 %255  ;;  %v274_v49 = vmul.f32 %v2154_v1, %v261_v42 }
  0xba   :  { %1808 = vtanh.f32 %v212_v41  ;;  %v273_v44 = vmul.f32 %v2154_v1, %v256_v43 }
  0xbb   :  { %v278_v57 = vadd.f32 %v274_v49, %v246_v53 }
  0xbc   :  { %v288_v47 = vpop.permute.xlu1 %287  ;;  %v277_v50 = vadd.f32 %v273_v44, %v245_v45 }
  0xbd   :  { %v234_v48 = vpop.permute.xlu0 %233  ;;  %v305_v51 = vmul.f32 %v2167_v8, %v288_v47 }
  0xbe   :  { %v243_v60 = vmul.f32 %v2148_v61, %v234_v48 }
  0xbf   :  { %v309_v54 = vadd.f32 %v305_v51, %v277_v50  ;;  %v1352_v51 = vld [vmem:[%s2457_s16] ss:$0 sm:$0xff] }
  0xc0   :  { %v1807_v52 = vpop.eup %1806  ;;  %v293_v55 = vpop.permute.xlu1 %292  ;;  %v247_v6 = vadd.f32 %v2159_v2, %v243_v60  ;;  %v1364_v60 = vld [vmem:[%s2458_s17 + $0xd0] sm:$0xff] }
  0xc1   :  { %v239_v56 = vpop.permute.xlu0 %238  ;;  %1534 = vmatprep.mubr.f32.mxu0 %v1807_v52  ;;  %1810 = vtanh.f32 %v309_v54  ;;  %v306_v58 = vmul.f32 %v2167_v8, %v293_v55 }
  0xc2   :  { %v244_v63 = vmul.f32 %v2148_v61, %v239_v56 }
  0xc3   :  { %v310_v62 = vadd.f32 %v306_v58, %v278_v57  ;;  %v1362_v57 = vld [vmem:[%s2458_s17 + $0xc0] sm:$0xff]  ;;  %v1363_v58 = vld [vmem:[%s2458_s17 + $0xc8] sm:$0xff] }
  0xc4   :  { %v1809_v59 = vpop.eup %1808  ;;  %v271_v0 = vpop.permute.xlu1 %270  ;;  %v248_v7 = vadd.f32 %v2159_v2, %v244_v63  ;;  %v1349_v2 = vld [vmem:[%s2454_s13] ss:$0 sm:$0xff] }
  0xc5   :  { %v266_v3 = vpop.permute.xlu0 %265  ;;  %1535 = vmatmul.mubr.f32.gmra.mrb[2].mxu0 %v1809_v59  ;;  %1812 = vtanh.f32 %v310_v62  ;;  %v276_v4 = vmul.f32 %v2154_v1, %v271_v0  ;;  %v1733_v59 = vpack.c.bf16 %v1363_v58, %v1362_v57  ;;  %v1365_v62 = vld [vmem:[%s2458_s17 + $0xd8] sm:$0xff]  ;;  %v1366_v0 = vld [vmem:[%s2458_s17 + $0xe0] sm:$0xff] }
  0xc6   :  { %v275_v5 = vmul.f32 %v2154_v1, %v266_v3  ;;  %v1737_v63 = vpack.c.bf16 %v1365_v62, %v1364_v60  ;;  %v1367_v3 = vld [vmem:[%s2458_s17 + $0xe8] sm:$0xff] }
  0xc7   :  { %v280_v11 = vadd.f32 %v276_v4, %v248_v7  ;;  %1734 = vmatprep.subr.bf16.mxu1 %v1733_v59  ;;  %v1741_v4 = vpack.c.bf16 %v1367_v3, %v1366_v0 }
  0xc8   :  { %v303_v9 = vpop.permute.xlu1 %302  ;;  %v279_v12 = vadd.f32 %v275_v5, %v247_v6  ;;  %1736 = vmatpush3.bf16.msra.mxu1 %v1733_v59  ;;  %v1368_v5 = vld [vmem:[%s2458_s17 + $0xf0] sm:$0xff]  ;;  %v1369_v6 = vld [vmem:[%s2458_s17 + $0xf8] sm:$0xff] }
  0xc9   :  { %v298_v10 = vpop.permute.xlu0 %297  ;;  %v308_v13 = vmul.f32 %v2167_v8, %v303_v9  ;;  %1738 = vmatprep.subr.bf16.mxu1 %v1737_v63  ;;  %v1745_v7 = vpack.c.bf16 %v1369_v6, %v1368_v5  ;;  %v1353_v9 = vld [vmem:[%s2459_s18] ss:$0 sm:$0xff] }
  0xca   :  { %v307_v61 = vmul.f32 %v2167_v8, %v298_v10 }
  0xcb   :  { %v1811_v14 = vpop.eup %1810  ;;  %v312_v15 = vadd.f32 %v308_v13, %v280_v11 }
  0xcc   :  { %v311_v16 = vadd.f32 %v307_v61, %v279_v12  ;;  %1537 = vmatprep.mubr.f32.mxu0 %v1811_v14  ;;  %v317_v1 = vmul.f32 %v1811_v14, %v1811_v14  ;;  %v325_v21 = vmul.f32 -2.0, %v1811_v14  ;;  %1740 = vmatpush3.bf16.msra.mxu1 %v1737_v63 }
  0xcd   :  { %1814 = vtanh.f32 %v312_v15  ;;  %1742 = vmatprep.subr.bf16.mxu1 %v1741_v4 }
  0xce   :  { %1816 = vtanh.f32 %v311_v16  ;;  %v321_v19 = vsub.f32 1.0, %v317_v1 }
  0xcf   :  { %v1813_v17 = vpop.eup %1812 }
  0xd0   :  { %1538 = vmatmul.mubr.f32.gmra.mrb[4].mxu0 %v1813_v17  ;;  %v318_v18 = vmul.f32 %v1813_v17, %v1813_v17  ;;  %v340_v24 = vmul.f32 %v1349_v2, %v321_v19  ;;  %v329_v26 = vmul.f32 %v325_v21, %v321_v19  ;;  %v326_v28 = vmul.f32 -2.0, %v1813_v17  ;;  %1744 = vmatpush3.bf16.msra.mxu1 %v1741_v4 }
  0xd1   :  { %v351_v39 = vmul.f32 %v1350_v33, %v321_v19  ;;  %1746 = vmatprep.subr.bf16.mxu1 %v1745_v7 }
  0xd2   :  { %v322_v23 = vsub.f32 1.0, %v318_v18  ;;  %v362_v36 = vmul.f32 %v1351_v27, %v329_v26  ;;  %v377_v53 = vmul.f32 %v1352_v51, %v329_v26 }
  0xd4   :  { %v341_v31 = vmul.f32 %v1349_v2, %v322_v23  ;;  %v330_v34 = vmul.f32 %v326_v28, %v322_v23  ;;  %v366_v43 = vadd.f32 %v362_v36, %v351_v39  ;;  %v352_v45 = vmul.f32 %v1350_v33, %v322_v23  ;;  %1748 = vmatpush3.bf16.msra.mxu1 %v1745_v7 }
  0xd6   :  { %v363_v41 = vmul.f32 %v1351_v27, %v330_v34  ;;  %v378_v54 = vmul.f32 %v1352_v51, %v330_v34 }
  0xd7   :  { %v1815_v20 = vpop.eup %1814 }
  0xd8   :  { %v1817_v22 = vpop.eup %1816  ;;  %v320_v8 = vmul.f32 %v1815_v20, %v1815_v20  ;;  %v328_v38 = vmul.f32 -2.0, %v1815_v20  ;;  %v367_v47 = vadd.f32 %v363_v41, %v352_v45 }
  0xd9   :  { %1540 = vmatprep.mubr.f32.mxu0 %v1817_v22  ;;  %v319_v25 = vmul.f32 %v1817_v22, %v1817_v22  ;;  %v327_v30 = vmul.f32 -2.0, %v1817_v22 }
  0xda   :  { %1541 = vmatmul.mubr.f32.gmra.mrb[6].mxu0 %v1815_v20  ;;  %v324_v32 = vsub.f32 1.0, %v320_v8 }
  0xdb   :  { %1543 = vmatprep.mubr.f32.mxu0 %v340_v24  ;;  %v323_v29 = vsub.f32 1.0, %v319_v25 }
  0xdc   :  { %v343_v40 = vmul.f32 %v1349_v2, %v324_v32  ;;  %v332_v42 = vmul.f32 %v328_v38, %v324_v32  ;;  %v354_v50 = vmul.f32 %v1350_v33, %v324_v32 }
  0xdd   :  { %v342_v35 = vmul.f32 %v1349_v2, %v323_v29  ;;  %v331_v37 = vmul.f32 %v327_v30, %v323_v29  ;;  %v353_v46 = vmul.f32 %v1350_v33, %v323_v29 }
  0xde   :  { %1544 = vmatmul.mubr.f32.gmra.mrb[8].mxu0 %v341_v31  ;;  %v365_v48 = vmul.f32 %v1351_v27, %v332_v42  ;;  %v380_v56 = vmul.f32 %v1352_v51, %v332_v42 }
  0xdf   :  { %1546 = vmatprep.mubr.f32.mxu0 %v342_v35  ;;  %v364_v44 = vmul.f32 %v1351_v27, %v331_v37  ;;  %v379_v55 = vmul.f32 %v1352_v51, %v331_v37 }
  0xe0   :  { %v369_v52 = vadd.f32 %v365_v48, %v354_v50 }
  0xe1   :  { %v368_v49 = vadd.f32 %v364_v44, %v353_v46 }
  0xe2   :  { %1547 = vmatmul.mubr.f32.gmra.mrb[10].mxu0 %v343_v40 }
  0xe3   :  { %1549 = vmatprep.mubr.f32.mxu0 %v366_v43 }
  0xe6   :  { %1550 = vmatmul.mubr.f32.gmra.mrb[12].mxu0 %v367_v47 }
  0xe7   :  { %1552 = vmatprep.mubr.f32.mxu0 %v368_v49 }
  0xea   :  { %1553 = vmatmul.mubr.f32.gmra.mrb[14].mxu0 %v369_v52 }
  0xeb   :  { %1555 = vmatprep.mubr.f32.mxu0 %v377_v53 }
  0xee   :  { %1556 = vmatmul.mubr.f32.gmra.mrb[16].mxu0 %v378_v54 }
  0xef   :  { %1558 = vmatprep.mubr.f32.mxu0 %v379_v55 }
  0xf2   :  { %1559 = vmatmul.mubr.f32.gmra.mrb[18].mxu0 %v380_v56 }
 0x18b   :  { %v1533_v10 = vpop.f32.mrb[0].mxu0 }
 0x18c   :  { %v572_v11 = vadd.f32 %v1533_v10, %v1353_v9  ;;  %v465_v12 = vpop.f32.mrb[1].mxu0 }
 0x18d   :  { %v571_v13 = vadd.f32 %v1353_v9, %v465_v12 }
 0x18f   :  { %1818 = vtanh.f32 %v571_v13 }
 0x190   :  { %1820 = vtanh.f32 %v572_v11 }
 0x198   :  { %v1536_v61 = vpop.f32.mrb[2].mxu0 }
 0x199   :  { %v574_v14 = vadd.f32 %v1536_v61, %v1353_v9  ;;  %v475_v15 = vpop.f32.mrb[3].mxu0  ;;  %v1819_v16 = vpop.eup %1818 }
 0x19a   :  { %v573_v17 = vadd.f32 %v1353_v9, %v475_v15  ;;  %v1821_v1 = vpop.eup %1820  ;;  %1593 = vmatprep.mubr.f32.mxu1 %v1819_v16  ;;  %v1372_v16 = vld [vmem:[%s2458_s17 + $0x100] sm:$0xff] }
 0x19b   :  { %1594 = vmatmul.mubr.f32.vlgmr.msra.gmra.mrb[0].mxu1 %v1821_v1  ;;  %v1374_v1 = vld [vmem:[%s2458_s17 + $0x110] sm:$0xff] }
 0x19c   :  { %1822 = vtanh.f32 %v573_v17  ;;  %v1373_v17 = vld [vmem:[%s2458_s17 + $0x108] sm:$0xff] }
 0x19d   :  { %1824 = vtanh.f32 %v574_v14 }
 0x1a3   :  { %v1539_v18 = vpop.f32.mrb[4].mxu0 }
 0x1a4   :  { %v576_v19 = vadd.f32 %v1539_v18, %v1353_v9  ;;  %v485_v2 = vpop.f32.mrb[5].mxu0 }
 0x1a5   :  { %v575_v21 = vadd.f32 %v1353_v9, %v485_v2  ;;  %v1375_v2 = vld [vmem:[%s2458_s17 + $0x118] sm:$0xff] }
 0x1a6   :  { %v1823_v20 = vpop.eup %1822  ;;  %1826 = vtanh.f32 %v576_v19  ;;  %v1749_v19 = vpack.c.bf16 %v1373_v17, %v1372_v16 }
 0x1a7   :  { %v1825_v22 = vpop.eup %1824  ;;  %1596 = vmatprep.mubr.f32.mxu1 %v1823_v20  ;;  %1828 = vtanh.f32 %v575_v21  ;;  %v1753_v20 = vpack.c.bf16 %v1375_v2, %v1374_v1  ;;  %v1376_v21 = vld [vmem:[%s2458_s17 + $0x120] sm:$0xff] }
 0x1a8   :  { %1597 = vmatmul.mubr.f32.gmra.mrb[2].mxu1 %v1825_v22  ;;  %v1377_v22 = vld [vmem:[%s2458_s17 + $0x128] sm:$0xff]  ;;  %1750 = vmatprep.subr.bf16.mxu0 %v1749_v19 }
 0x1a9   :  { %1781 = vmatprep.subr.bf16.mxu1 %v1749_v19  ;;  %1752 = vmatpush3.bf16.msra.mxu0 %v1749_v19 }
 0x1aa   :  { %1789 = vmatpush3.bf16.msra.mxu1 %v1749_v19  ;;  %1754 = vmatprep.subr.bf16.mxu0 %v1753_v20 }
 0x1ab   :  { %1782 = vmatprep.subr.bf16.mxu1 %v1753_v20 }
 0x1ad   :  { %v1542_v23 = vpop.f32.mrb[6].mxu0  ;;  %1756 = vmatpush3.bf16.msra.mxu0 %v1753_v20 }
 0x1ae   :  { %v578_v8 = vadd.f32 %v1542_v23, %v1353_v9  ;;  %v495_v24 = vpop.f32.mrb[7].mxu0  ;;  %v1757_v23 = vpack.c.bf16 %v1377_v22, %v1376_v21  ;;  %1790 = vmatpush3.bf16.msra.mxu1 %v1753_v20 }
 0x1af   :  { %v577_v25 = vadd.f32 %v1353_v9, %v495_v24  ;;  %v1379_v24 = vld [vmem:[%s2458_s17 + $0x138] sm:$0xff] }
 0x1b0   :  { %v1827_v26 = vpop.eup %1826  ;;  %1830 = vtanh.f32 %v578_v8  ;;  %v1378_v8 = vld [vmem:[%s2458_s17 + $0x130] sm:$0xff]  ;;  %1758 = vmatprep.subr.bf16.mxu0 %v1757_v23  ;;  %1783 = vmatprep.subr.bf16.mxu1 %v1757_v23 }
 0x1b1   :  { %v1829_v27 = vpop.eup %1828  ;;  %1832 = vtanh.f32 %v577_v25  ;;  %v1545_v28 = vpop.f32.mrb[8].mxu0  ;;  %v588_v29 = vmul.f32 %v1827_v26, %v1827_v26  ;;  %v596_v33 = vmul.f32 -2.0, %v1827_v26  ;;  %v1761_v25 = vpack.c.bf16 %v1379_v24, %v1378_v8  ;;  %1760 = vmatpush3.bf16.msra.mxu0 %v1757_v23 }
 0x1b2   :  { %v505_v30 = vpop.f32.mrb[9].mxu0  ;;  %v587_v31 = vmul.f32 %v1829_v27, %v1829_v27  ;;  %1599 = vmatprep.mubr.f32.mxu1 %v1829_v27  ;;  %v595_v35 = vmul.f32 -2.0, %v1829_v27  ;;  %1791 = vmatpush3.bf16.msra.mxu1 %v1757_v23  ;;  %v1381_v27 = vld [vmem:[%s2458_s17 + $0x148] sm:$0xff] }
 0x1b3   :  { %v592_v32 = vsub.f32 1.0, %v588_v29  ;;  %1600 = vmatmul.mubr.f32.gmra.mrb[4].mxu1 %v1827_v26  ;;  %1762 = vmatprep.subr.bf16.mxu0 %v1761_v25  ;;  %v1380_v26 = vld [vmem:[%s2458_s17 + $0x140] sm:$0xff]  ;;  %v1382_v29 = vld [vmem:[%s2458_s17 + $0x150] sm:$0xff] }
 0x1b4   :  { %v591_v34 = vsub.f32 1.0, %v587_v31  ;;  %1784 = vmatprep.subr.bf16.mxu1 %v1761_v25 }
 0x1b5   :  { %v600_v36 = vmul.f32 %v596_v33, %v592_v32  ;;  %v620_v37 = vmul.f32 %v1545_v28, %v592_v32  ;;  %v1548_v38 = vpop.f32.mrb[10].mxu0  ;;  %1764 = vmatpush3.bf16.msra.mxu0 %v1761_v25  ;;  %v1385_v33 = vld [vmem:[%s2458_s17 + $0x168] sm:$0xff] }
 0x1b6   :  { %v599_v39 = vmul.f32 %v595_v35, %v591_v34  ;;  %v619_v40 = vmul.f32 %v591_v34, %v505_v30  ;;  %v515_v41 = vpop.f32.mrb[11].mxu0  ;;  %1792 = vmatpush3.bf16.msra.mxu1 %v1761_v25  ;;  %v1386_v35 = vld [vmem:[%s2458_s17 + $0x170] sm:$0xff] }
 0x1b7   :  { %v604_v42 = vmul.f32 %v1545_v28, %v600_v36  ;;  %v1387_v36 = vld [vmem:[%s2458_s17 + $0x178] sm:$0xff] }
 0x1b8   :  { %v603_v43 = vmul.f32 %v599_v39, %v505_v30 }
 0x1b9   :  { %v608_v44 = vmul.f32 %v1545_v28, %v604_v42  ;;  %v1551_v45 = vpop.f32.mrb[12].mxu0  ;;  %v1765_v28 = vpack.c.bf16 %v1381_v27, %v1380_v26 }
 0x1ba   :  { %v1831_v46 = vpop.eup %1830  ;;  %v607_v47 = vmul.f32 %v603_v43, %v505_v30  ;;  %v2236_v48 = vmul.f32 %v1551_v45, %v592_v32  ;;  %v525_v49 = vpop.f32.mrb[13].mxu0  ;;  %v1383_v30 = vld [vmem:[%s2458_s17 + $0x158] sm:$0xff] }
 0x1bb   :  { %v1833_v50 = vpop.eup %1832  ;;  %v590_v51 = vmul.f32 %v1831_v46, %v1831_v46  ;;  %v2238_v52 = vmul.f32 %v591_v34, %v525_v49  ;;  %613 = vrot.lane.b32.xlu1 %v608_v44, %s1882_s12  ;;  %v598_v55 = vmul.f32 -2.0, %v1831_v46  ;;  %1766 = vmatprep.subr.bf16.mxu0 %v1765_v28  ;;  %v1769_v31 = vpack.c.bf16 %v1383_v30, %v1382_v29 }
 0x1bc   :  { %v589_v53 = vmul.f32 %v1833_v50, %v1833_v50  ;;  %1602 = vmatprep.mubr.f32.mxu1 %v1833_v50  ;;  %611 = vrot.lane.b32.xlu0 %v607_v47, %s1882_s12  ;;  %v597_v58 = vmul.f32 -2.0, %v1833_v50 }
 0x1bd   :  { %v594_v54 = vsub.f32 1.0, %v590_v51  ;;  %1603 = vmatmul.mubr.f32.gmra.mrb[6].mxu1 %v1831_v46  ;;  %v1554_v56 = vpop.f32.mrb[14].mxu0  ;;  %1785 = vmatprep.subr.bf16.mxu1 %v1765_v28 }
 0x1be   :  { %v593_v57 = vsub.f32 1.0, %v589_v53  ;;  %v535_v59 = vpop.f32.mrb[15].mxu0  ;;  %1605 = vmatprep.mubr.f32.mxu1 %v619_v40  ;;  %1768 = vmatpush3.bf16.msra.mxu0 %v1765_v28  ;;  %v381_v40 = vld [vmem:[%s2461_s20] sm:$0x1] }
 0x1bf   :  { %v602_v60 = vmul.f32 %v598_v55, %v594_v54  ;;  %v622_v62 = vmul.f32 %v1548_v38, %v594_v54  ;;  %v2242_v63 = vmul.f32 %v1554_v56, %v594_v54  ;;  %1793 = vmatpush3.bf16.msra.mxu1 %v1765_v28  ;;  %1770 = vmatprep.subr.bf16.mxu0 %v1769_v31 }
 0x1c0   :  { %v601_v0 = vmul.f32 %v597_v58, %v593_v57  ;;  %v621_v3 = vmul.f32 %v593_v57, %v515_v41  ;;  %v2244_v4 = vmul.f32 %v593_v57, %v535_v59  ;;  %1786 = vmatprep.subr.bf16.mxu1 %v1769_v31 }
 0x1c1   :  { %v606_v5 = vmul.f32 %v1548_v38, %v602_v60  ;;  %v1557_v6 = vpop.f32.mrb[16].mxu0  ;;  %1606 = vmatmul.mubr.f32.gmra.mrb[8].mxu1 %v620_v37  ;;  %v1777_v37 = vpack.c.bf16 %v1387_v36, %v1386_v35 }
 0x1c2   :  { %v605_v7 = vmul.f32 %v601_v0, %v515_v41  ;;  %v2246_v9 = vmul.f32 %v1557_v6, %v592_v32  ;;  %v545_v10 = vpop.f32.mrb[17].mxu0  ;;  %1608 = vmatprep.mubr.f32.mxu1 %v621_v3  ;;  %v1384_v32 = vld [vmem:[%s2458_s17 + $0x160] sm:$0xff]  ;;  %1772 = vmatpush3.bf16.msra.mxu0 %v1769_v31 }
 0x1c3   :  { %v610_v11 = vmul.f32 %v1548_v38, %v606_v5  ;;  %v2248_v12 = vmul.f32 %v591_v34, %v545_v10  ;;  %v1773_v34 = vpack.c.bf16 %v1385_v33, %v1384_v32  ;;  %1794 = vmatpush3.bf16.msra.mxu1 %v1769_v31  ;;  %v628_v38 = vlaneseq }
 0x1c4   :  { %v609_v13 = vmul.f32 %v605_v7, %v515_v41  ;;  %v382_v41 = vsub.f32 1.0, %v381_v40 }
 0x1c5   :  { %617 = vrot.lane.b32.xlu1 %v610_v11, %s1882_s12  ;;  %v1560_v61 = vpop.f32.mrb[18].mxu0  ;;  %1609 = vmatmul.mubr.f32.gmra.mrb[10].mxu1 %v622_v62  ;;  %v629_v39 = vshrl.u32 %v628_v38, 7 }
 0x1c6   :  { %v2251_v14 = vmul.f32 %v1560_v61, %v594_v54  ;;  %615 = vrot.lane.b32.xlu0 %v609_v13, %s1882_s12  ;;  %v555_v15 = vpop.f32.mrb[19].mxu0  ;;  %1774 = vmatprep.subr.bf16.mxu0 %v1773_v34 }
 0x1c7   :  { %v2263_v18 = vmul.f32 %v593_v57, %v555_v15  ;;  %1787 = vmatprep.subr.bf16.mxu1 %v1773_v34  ;;  %1776 = vmatpush3.bf16.msra.mxu0 %v1773_v34  ;;  %v630_v42 = vsub.s32 0, %v629_v39 }
 0x1c8   :  { %1795 = vmatpush3.bf16.msra.mxu1 %v1773_v34  ;;  %1778 = vmatprep.subr.bf16.mxu0 %v1777_v37 }
 0x1c9   :  { %1788 = vmatprep.subr.bf16.mxu1 %v1777_v37  ;;  %v2308_v43 = vrot.slane %v382_v41, %v630_v42  ;;  %v2314_v51 = vrot.slane %v381_v40, %v630_v42 }
 0x1cb   :  { %1780 = vmatpush3.bf16.msra.mxu0 %v1777_v37 }
 0x1cc   :  { %1796 = vmatpush3.bf16.msra.mxu1 %v1777_v37 }
 0x22d   :  { %v614_v44 = vpop.permute.xlu1 %613 }
 0x22e   :  { %v634_v45 = vmul.f32 %v2308_v43, %v614_v44  ;;  %v612_v46 = vpop.permute.xlu0 %611  ;;  %v652_v59 = vmul.f32 %v2314_v51, %v614_v44 }
 0x22f   :  { %v633_v47 = vmul.f32 %v2308_v43, %v612_v46  ;;  %v651_v56 = vmul.f32 %v2314_v51, %v612_v46 }
 0x230   :  { %v638_v50 = vadd.f32 %v634_v45, %v2236_v48  ;;  %v656_v62 = vadd.f32 %v652_v59, %v2246_v9 }
 0x231   :  { %v637_v49 = vadd.f32 %v633_v47, %v2238_v52  ;;  %v655_v48 = vadd.f32 %v651_v56, %v2248_v12 }
 0x233   :  { %1611 = vmatprep.mubr.f32.mxu1 %v637_v49 }
 0x234   :  { %1612 = vmatmul.mubr.f32.gmra.mrb[12].mxu1 %v638_v50 }
 0x237   :  { %v618_v53 = vpop.permute.xlu1 %617 }
 0x238   :  { %v636_v54 = vmul.f32 %v2308_v43, %v618_v53  ;;  %v616_v55 = vpop.permute.xlu0 %615  ;;  %v654_v0 = vmul.f32 %v2314_v51, %v618_v53 }
 0x239   :  { %v635_v57 = vmul.f32 %v2308_v43, %v616_v55  ;;  %v653_v60 = vmul.f32 %v2314_v51, %v616_v55 }
 0x23a   :  { %v640_v52 = vadd.f32 %v636_v54, %v2242_v63  ;;  %v1371_v63 = vld [vmem:[%s2459_s18 + $0x1] ss:$0 sm:$0xff] }
 0x23b   :  { %v639_v58 = vadd.f32 %v635_v57, %v2244_v4  ;;  %v657_v3 = vadd.f32 %v653_v60, %v2263_v18  ;;  %v658_v4 = vadd.f32 %v654_v0, %v2251_v14 }
 0x23d   :  { %1614 = vmatprep.mubr.f32.mxu1 %v639_v58 }
 0x23e   :  { %1615 = vmatmul.mubr.f32.gmra.mrb[14].mxu1 %v640_v52 }
 0x23f   :  { %1617 = vmatprep.mubr.f32.mxu1 %v655_v48 }
 0x242   :  { %1618 = vmatmul.mubr.f32.gmra.mrb[16].mxu1 %v656_v62 }
 0x243   :  { %1620 = vmatprep.mubr.f32.mxu1 %v657_v3 }
 0x246   :  { %1621 = vmatmul.mubr.f32.gmra.mrb[18].mxu1 %v658_v4 }
 0x26e   :  { %v1595_v5 = vpop.f32.mrb[0].mxu1 }
 0x26f   :  { %v850_v6 = vadd.f32 %v1595_v5, %v1371_v63  ;;  %v742_v7 = vpop.f32.mrb[1].mxu1 }
 0x270   :  { %v849_v10 = vadd.f32 %v1371_v63, %v742_v7 }
 0x272   :  { %1834 = vtanh.f32 %v849_v10 }
 0x273   :  { %1836 = vtanh.f32 %v850_v6 }
 0x27b   :  { %v1598_v9 = vpop.f32.mrb[2].mxu1 }
 0x27c   :  { %v852_v11 = vadd.f32 %v1598_v9, %v1371_v63  ;;  %v752_v12 = vpop.f32.mrb[3].mxu1  ;;  %v1835_v13 = vpop.eup %1834 }
 0x27d   :  { %v851_v61 = vadd.f32 %v1371_v63, %v752_v12  ;;  %v1837_v15 = vpop.eup %1836  ;;  %1655 = vmatprep.mubr.f32.mxu0 %v1835_v13 }
 0x27e   :  { %1656 = vmatmul.mubr.f32.vlgmr.msra.gmra.mrb[20].mxu0 %v1837_v15 }
 0x27f   :  { %1838 = vtanh.f32 %v851_v61 }
 0x280   :  { %1840 = vtanh.f32 %v852_v11 }
 0x286   :  { %v1601_v14 = vpop.f32.mrb[4].mxu1 }
 0x287   :  { %v854_v16 = vadd.f32 %v1601_v14, %v1371_v63  ;;  %v762_v17 = vpop.f32.mrb[5].mxu1 }
 0x288   :  { %v853_v18 = vadd.f32 %v1371_v63, %v762_v17 }
 0x289   :  { %v1839_v1 = vpop.eup %1838  ;;  %1842 = vtanh.f32 %v854_v16 }
 0x28a   :  { %v1841_v19 = vpop.eup %1840  ;;  %1658 = vmatprep.mubr.f32.mxu0 %v1839_v1  ;;  %1844 = vtanh.f32 %v853_v18 }
 0x28b   :  { %1659 = vmatmul.mubr.f32.gmra.mrb[22].mxu0 %v1841_v19 }
 0x290   :  { %v1604_v2 = vpop.f32.mrb[6].mxu1 }
 0x291   :  { %v856_v20 = vadd.f32 %v1604_v2, %v1371_v63  ;;  %v772_v21 = vpop.f32.mrb[7].mxu1 }
 0x292   :  { %v855_v22 = vadd.f32 %v1371_v63, %v772_v21 }
 0x293   :  { %v1843_v23 = vpop.eup %1842  ;;  %1846 = vtanh.f32 %v856_v20 }
 0x294   :  { %v1845_v8 = vpop.eup %1844  ;;  %1848 = vtanh.f32 %v855_v22  ;;  %v1607_v24 = vpop.f32.mrb[8].mxu1  ;;  %v866_v25 = vmul.f32 %v1843_v23, %v1843_v23  ;;  %v874_v29 = vmul.f32 -2.0, %v1843_v23 }
 0x295   :  { %v782_v26 = vpop.f32.mrb[9].mxu1  ;;  %v865_v27 = vmul.f32 %v1845_v8, %v1845_v8  ;;  %1661 = vmatprep.mubr.f32.mxu0 %v1845_v8  ;;  %v873_v31 = vmul.f32 -2.0, %v1845_v8 }
 0x296   :  { %v2331_v28 = vsub.f32 1.0, %v866_v25  ;;  %1662 = vmatmul.mubr.f32.gmra.mrb[24].mxu0 %v1843_v23 }
 0x297   :  { %v869_v30 = vsub.f32 1.0, %v865_v27 }
 0x298   :  { %v878_v32 = vmul.f32 %v874_v29, %v2331_v28  ;;  %v1610_v33 = vpop.f32.mrb[10].mxu1  ;;  %v898_v54 = vmul.f32 %v1607_v24, %v2331_v28 }
 0x299   :  { %v877_v34 = vmul.f32 %v873_v31, %v869_v30  ;;  %v792_v35 = vpop.f32.mrb[11].mxu1  ;;  %v897_v45 = vmul.f32 %v869_v30, %v782_v26 }
 0x29a   :  { %v882_v36 = vmul.f32 %v1607_v24, %v878_v32 }
 0x29b   :  { %v881_v37 = vmul.f32 %v877_v34, %v782_v26 }
 0x29c   :  { %v886_v39 = vmul.f32 %v1607_v24, %v882_v36 }
 0x29d   :  { %v1847_v40 = vpop.eup %1846  ;;  %v885_v41 = vmul.f32 %v881_v37, %v782_v26 }
 0x29e   :  { %v1849_v42 = vpop.eup %1848  ;;  %v868_v44 = vmul.f32 %v1847_v40, %v1847_v40  ;;  %891 = vrot.lane.b32.xlu1 %v886_v39, %s1882_s12  ;;  %v876_v49 = vmul.f32 -2.0, %v1847_v40 }
 0x29f   :  { %v867_v46 = vmul.f32 %v1849_v42, %v1849_v42  ;;  %1664 = vmatprep.mubr.f32.mxu0 %v1849_v42  ;;  %889 = vrot.lane.b32.xlu0 %v885_v41, %s1882_s12  ;;  %v875_v53 = vmul.f32 -2.0, %v1849_v42 }
 0x2a0   :  { %v872_v47 = vsub.f32 1.0, %v868_v44  ;;  %1665 = vmatmul.mubr.f32.gmra.mrb[26].mxu0 %v1847_v40 }
 0x2a1   :  { %v871_v50 = vsub.f32 1.0, %v867_v46  ;;  %1667 = vmatprep.mubr.f32.mxu0 %v897_v45 }
 0x2a2   :  { %v880_v55 = vmul.f32 %v876_v49, %v872_v47  ;;  %v900_v59 = vmul.f32 %v1610_v33, %v872_v47 }
 0x2a3   :  { %v879_v56 = vmul.f32 %v875_v53, %v871_v50  ;;  %v899_v57 = vmul.f32 %v871_v50, %v792_v35 }
 0x2a4   :  { %v884_v58 = vmul.f32 %v1610_v33, %v880_v55  ;;  %1668 = vmatmul.mubr.f32.gmra.mrb[28].mxu0 %v898_v54 }
 0x2a5   :  { %v883_v52 = vmul.f32 %v879_v56, %v792_v35  ;;  %1670 = vmatprep.mubr.f32.mxu1 %v899_v57 }
 0x2a6   :  { %v888_v48 = vmul.f32 %v1610_v33, %v884_v58  ;;  %1671 = vmatmul.mubr.f32.vlgmr.msra.gmra.mrb[20].mxu1 %v900_v59 }
 0x2a7   :  { %v887_v60 = vmul.f32 %v883_v52, %v792_v35 }
 0x2a8   :  { %895 = vrot.lane.b32.xlu1 %v888_v48, %s1882_s12 }
 0x2a9   :  { %893 = vrot.lane.b32.xlu0 %v887_v60, %s1882_s12 }
 0x307   :  { %v1613_v62 = vpop.f32.mrb[12].mxu1 }
 0x308   :  { %v802_v0 = vpop.f32.mrb[13].mxu1  ;;  %v902_v9 = vmul.f32 %v1613_v62, %v2331_v28 }
 0x309   :  { %v901_v6 = vmul.f32 %v869_v30, %v802_v0 }
 0x310   :  { %v892_v3 = vpop.permute.xlu1 %891 }
 0x311   :  { %v906_v4 = vmul.f32 %v892_v3, %v2308_v43  ;;  %v1616_v63 = vpop.f32.mrb[14].mxu1  ;;  %v890_v5 = vpop.permute.xlu0 %889  ;;  %v918_v27 = vmul.f32 %v892_v3, %v2314_v51 }
 0x312   :  { %v905_v7 = vmul.f32 %v890_v5, %v2308_v43  ;;  %v812_v10 = vpop.f32.mrb[15].mxu1  ;;  %v904_v20 = vmul.f32 %v1616_v63, %v872_v47  ;;  %v917_v21 = vmul.f32 %v890_v5, %v2314_v51 }
 0x313   :  { %v910_v12 = vadd.f32 %v906_v4, %v902_v9  ;;  %v903_v18 = vmul.f32 %v871_v50, %v812_v10 }
 0x314   :  { %v909_v11 = vadd.f32 %v905_v7, %v901_v6 }
 0x315   :  { %v1619_v13 = vpop.f32.mrb[16].mxu1 }
 0x316   :  { %v822_v61 = vpop.f32.mrb[17].mxu1  ;;  %1673 = vmatprep.mubr.f32.mxu1 %v909_v11  ;;  %v914_v23 = vmul.f32 %v1619_v13, %v2331_v28  ;;  %v1389_v28 = vld [vmem:[%s2459_s18 + $0x2] ss:$0 sm:$0xff] }
 0x317   :  { %1674 = vmatmul.mubr.f32.gmra.mrb[22].mxu1 %v910_v12  ;;  %v913_v19 = vmul.f32 %v869_v30, %v822_v61 }
 0x318   :  { %v922_v29 = vadd.f32 %v918_v27, %v914_v23 }
 0x319   :  { %v1622_v15 = vpop.f32.mrb[18].mxu1  ;;  %v921_v24 = vadd.f32 %v917_v21, %v913_v19 }
 0x31a   :  { %v896_v14 = vpop.permute.xlu1 %895  ;;  %v832_v16 = vpop.f32.mrb[19].mxu1  ;;  %v916_v30 = vmul.f32 %v1622_v15, %v872_v47 }
 0x31b   :  { %v908_v17 = vmul.f32 %v896_v14, %v2308_v43  ;;  %v894_v1 = vpop.permute.xlu0 %893  ;;  %v915_v25 = vmul.f32 %v871_v50, %v832_v16  ;;  %v920_v31 = vmul.f32 %v896_v14, %v2314_v51 }
 0x31c   :  { %v907_v2 = vmul.f32 %v894_v1, %v2308_v43  ;;  %v919_v26 = vmul.f32 %v894_v1, %v2314_v51 }
 0x31d   :  { %v912_v8 = vadd.f32 %v908_v17, %v904_v20  ;;  %v924_v33 = vadd.f32 %v920_v31, %v916_v30 }
 0x31e   :  { %v911_v22 = vadd.f32 %v907_v2, %v903_v18  ;;  %v923_v32 = vadd.f32 %v919_v26, %v915_v25 }
 0x320   :  { %1676 = vmatprep.mubr.f32.mxu1 %v911_v22 }
 0x321   :  { %1677 = vmatmul.mubr.f32.gmra.mrb[24].mxu1 %v912_v8 }
 0x322   :  { %1679 = vmatprep.mubr.f32.mxu1 %v921_v24 }
 0x325   :  { %1680 = vmatmul.mubr.f32.gmra.mrb[26].mxu1 %v922_v29 }
 0x326   :  { %1682 = vmatprep.mubr.f32.mxu1 %v923_v32 }
 0x329   :  { %1683 = vmatmul.mubr.f32.gmra.mrb[28].mxu1 %v924_v33 }
 0x351   :  { %v1657_v34 = vpop.f32.mrb[20].mxu0 }
 0x352   :  { %v2352_v35 = vadd.f32 %v1657_v34, %v1389_v28  ;;  %v1008_v36 = vpop.f32.mrb[21].mxu0 }
 0x353   :  { %v2354_v37 = vadd.f32 %v1389_v28, %v1008_v36 }
 0x35e   :  { %v1660_v39 = vpop.f32.mrb[22].mxu0 }
 0x35f   :  { %v2356_v40 = vadd.f32 %v1660_v39, %v1389_v28  ;;  %v1018_v41 = vpop.f32.mrb[23].mxu0 }
 0x360   :  { %v2358_v42 = vadd.f32 %v1389_v28, %v1018_v41 }
 0x369   :  { %v1663_v44 = vpop.f32.mrb[24].mxu0 }
 0x36a   :  { %v1120_v45 = vadd.f32 %v1663_v44, %v1389_v28  ;;  %v1028_v46 = vpop.f32.mrb[25].mxu0 }
 0x36b   :  { %v1119_v47 = vadd.f32 %v1389_v28, %v1028_v46 }
 0x36c   :  { %1850 = vtanh.f32 %v1120_v45 }
 0x36d   :  { %1852 = vtanh.f32 %v1119_v47 }
 0x373   :  { %v1666_v49 = vpop.f32.mrb[26].mxu0 }
 0x374   :  { %v1122_v50 = vadd.f32 %v1666_v49, %v1389_v28  ;;  %v1038_v53 = vpop.f32.mrb[27].mxu0 }
 0x375   :  { %v1121_v54 = vadd.f32 %v1389_v28, %v1038_v53 }
 0x376   :  { %v1851_v55 = vpop.eup %1850  ;;  %1854 = vtanh.f32 %v1122_v50 }
 0x377   :  { %v1853_v56 = vpop.eup %1852  ;;  %1856 = vtanh.f32 %v1121_v54  ;;  %v1669_v57 = vpop.f32.mrb[28].mxu0  ;;  %v1132_v58 = vmul.f32 %v1851_v55, %v1851_v55  ;;  %v1140_v60 = vmul.f32 -2.0, %v1851_v55 }
 0x378   :  { %v1048_v59 = vpop.f32.mrb[29].mxu0  ;;  %v1131_v52 = vmul.f32 %v1853_v56, %v1853_v56  ;;  %v1139_v3 = vmul.f32 -2.0, %v1853_v56  ;;  %1858 = vtanh.f32 %v2354_v37 }
 0x379   :  { %v1136_v48 = vsub.f32 1.0, %v1132_v58  ;;  %v1672_v62 = vpop.f32.mrb[20].mxu1  ;;  %1860 = vtanh.f32 %v2352_v35 }
 0x37a   :  { %v1135_v0 = vsub.f32 1.0, %v1131_v52  ;;  %v1058_v4 = vpop.f32.mrb[21].mxu1  ;;  %1862 = vtanh.f32 %v2358_v42 }
 0x37b   :  { %v1144_v63 = vmul.f32 %v1140_v60, %v1136_v48  ;;  %1864 = vtanh.f32 %v2356_v40 }
 0x37c   :  { %v1143_v5 = vmul.f32 %v1139_v3, %v1135_v0 }
 0x37d   :  { %v1148_v6 = vmul.f32 %v1669_v57, %v1144_v63 }
 0x37e   :  { %v1147_v7 = vmul.f32 %v1143_v5, %v1048_v59 }
 0x37f   :  { %v1152_v10 = vmul.f32 %v1669_v57, %v1148_v6 }
 0x380   :  { %v1855_v9 = vpop.eup %1854  ;;  %v1151_v11 = vmul.f32 %v1147_v7, %v1048_v59 }
 0x381   :  { %v1857_v12 = vpop.eup %1856  ;;  %v1134_v13 = vmul.f32 %v1855_v9, %v1855_v9  ;;  %1157 = vrot.lane.b32.xlu1 %v1152_v10, %s1882_s12  ;;  %v1142_v14 = vmul.f32 -2.0, %v1855_v9 }
 0x382   :  { %v1133_v61 = vmul.f32 %v1857_v12, %v1857_v12  ;;  %1155 = vrot.lane.b32.xlu0 %v1151_v11, %s1882_s12  ;;  %v1141_v17 = vmul.f32 -2.0, %v1857_v12  ;;  %v1859_v52 = vpop.eup %1858 }
 0x383   :  { %v2362_v15 = vsub.f32 1.0, %v1134_v13 }
 0x384   :  { %v2364_v16 = vsub.f32 1.0, %v1133_v61 }
 0x385   :  { %v1146_v1 = vmul.f32 %v1142_v14, %v2362_v15 }
 0x386   :  { %v1145_v18 = vmul.f32 %v1141_v17, %v2364_v16 }
 0x387   :  { %v1150_v19 = vmul.f32 %v1672_v62, %v1146_v1 }
 0x388   :  { %v1149_v2 = vmul.f32 %v1145_v18, %v1058_v4 }
 0x389   :  { %v1154_v20 = vmul.f32 %v1672_v62, %v1150_v19 }
 0x38a   :  { %v1153_v21 = vmul.f32 %v1149_v2, %v1058_v4 }
 0x38b   :  { %1161 = vrot.lane.b32.xlu1 %v1154_v20, %s1882_s12 }
 0x38c   :  { %1159 = vrot.lane.b32.xlu0 %v1153_v21, %s1882_s12 }
 0x3ea   :  { %v1675_v22 = vpop.f32.mrb[22].mxu1 }
 0x3eb   :  { %v1068_v23 = vpop.f32.mrb[23].mxu1  ;;  %v1164_v24 = vmul.f32 %v1675_v22, %v1136_v48 }
 0x3ec   :  { %v1163_v29 = vmul.f32 %v1135_v0, %v1068_v23 }
 0x3f3   :  { %v1158_v8 = vpop.permute.xlu1 %1157 }
 0x3f4   :  { %v1168_v25 = vmul.f32 %v1158_v8, %v2308_v43  ;;  %v1678_v26 = vpop.f32.mrb[24].mxu1  ;;  %v1156_v27 = vpop.permute.xlu0 %1155  ;;  %v1180_v34 = vmul.f32 %v1158_v8, %v2314_v51 }
 0x3f5   :  { %v1167_v30 = vmul.f32 %v1156_v27, %v2308_v43  ;;  %v1078_v31 = vpop.f32.mrb[25].mxu1  ;;  %v1179_v41 = vmul.f32 %v1156_v27, %v2314_v51  ;;  %v1166_v53 = vmul.f32 %v1678_v26, %v2362_v15 }
 0x3f6   :  { %v1172_v32 = vadd.f32 %v1168_v25, %v1164_v24  ;;  %v1165_v56 = vmul.f32 %v2364_v16, %v1078_v31 }
 0x3f7   :  { %v1171_v33 = vadd.f32 %v1167_v30, %v1163_v29  ;;  %v1212_v30 = vld [vmem:[%s2484_s24 + $0x8] sm:$0xff] }
 0x3f8   :  { %v1681_v28 = vpop.f32.mrb[26].mxu1  ;;  %1249 = vrot.lane.b32.xlu1 %v1172_v32, %s1882_s12 }
 0x3f9   :  { %v1176_v36 = vmul.f32 %v1681_v28, %v1136_v48  ;;  %v1088_v39 = vpop.f32.mrb[27].mxu1  ;;  %1247 = vrot.lane.b32.xlu0 %v1171_v33, %s1882_s12  ;;  %v1390_v48 = vld [vmem:[%s2460_s19] ss:$0 sm:$0xff]  ;;  %s1342_s19 = sld [smem:[#allocation2 + $0x2]] }
 0x3fa   :  { %v1175_v44 = vmul.f32 %v1135_v0, %v1088_v39  ;;  %v1194_v60 = vmul.f32 %v1859_v52, %v1390_v48  ;;  %v1223_v39 = vld [vmem:[%s2448_s7] sm:$0xff] }
 0x3fb   :  { %v1184_v45 = vadd.f32 %v1180_v34, %v1176_v36 }
 0x3fc   :  { %v1684_v46 = vpop.f32.mrb[28].mxu1  ;;  %v1183_v47 = vadd.f32 %v1179_v41, %v1175_v44 }
 0x3fd   :  { %v1162_v49 = vpop.permute.xlu1 %1161  ;;  %v1098_v50 = vpop.f32.mrb[29].mxu1  ;;  %v1178_v10 = vmul.f32 %v1684_v46, %v2362_v15  ;;  %v1225_v46 = vld [vmem:[%s2448_s7 + $0x10] sm:$0xff] }
 0x3fe   :  { %v1170_v54 = vmul.f32 %v1162_v49, %v2308_v43  ;;  %v1160_v55 = vpop.permute.xlu0 %1159  ;;  %v1182_v9 = vmul.f32 %v1162_v49, %v2314_v51  ;;  %v1177_v12 = vmul.f32 %v2364_v16, %v1098_v50  ;;  %v1211_v16 = vld [vmem:[%s2484_s24] sm:$0xff] }
 0x3ff   :  { %v1169_v57 = vmul.f32 %v1160_v55, %v2308_v43  ;;  %v1861_v43 = vpop.eup %1860  ;;  %v1181_v13 = vmul.f32 %v1160_v55, %v2314_v51  ;;  %v1206_v51 = vstv %s1342_s19 }
 0x400   :  { %v1174_v58 = vadd.f32 %v1170_v54, %v1166_v53  ;;  %v1863_v62 = vpop.eup %1862  ;;  %v1195_v0 = vmul.f32 %v1861_v43, %v1390_v48  ;;  %v1186_v1 = vadd.f32 %v1182_v9, %v1178_v10 }
 0x401   :  { %v1173_v59 = vadd.f32 %v1169_v57, %v1165_v56  ;;  %v1196_v3 = vmul.f32 %v1863_v62, %v1390_v48  ;;  %v1865_v4 = vpop.eup %1864  ;;  %v1185_v19 = vadd.f32 %v1181_v13, %v1177_v12 }
 0x402   :  { %1253 = vrot.lane.b32.xlu1 %v1174_v58, %s1882_s12  ;;  %v1197_v37 = vmul.f32 %v1865_v4, %v1390_v48 }
 0x403   :  { %1251 = vrot.lane.b32.xlu0 %v1173_v59, %s1882_s12  ;;  %s84_s12 = sld [smem:[#allocation2]] }
 0x409   :  { %v1259_v42 = vstv %s84_s12  ;;  %s1341_s12 = sld [smem:[#allocation2 + $0x1]] }
 0x422   :  { %1198 = vadd.xlane.f32.xlu0 %v1194_v60 }
 0x426   :  { %1200 = vadd.xlane.f32.xlu1 %v1195_v0  ;;  %1202 = vadd.xlane.f32.xlu0 %v1196_v3 }
 0x42a   :  { %1204 = vadd.xlane.f32.xlu0 %v1197_v37 }
 0x46a   :  { %v1250_v35 = vpop.permute.xlu1 %1249 }
 0x46b   :  { %v1256_v40 = vadd.f32 %v1250_v35, %v1184_v45  ;;  %v1248_v63 = vpop.permute.xlu0 %1247  ;;  %v1224_v45 = vld [vmem:[%s2448_s7 + $0x8] sm:$0xff] }
 0x46c   :  { %v1255_v5 = vadd.f32 %v1248_v63, %v1183_v47  ;;  %v1214_v47 = vld [vmem:[%s2484_s24 + $0x18] sm:$0xff] }
 0x46d   :  { %v1261_v6 = vmul.f32 %v1259_v42, %v1256_v40 }
 0x46e   :  { %v1260_v7 = vmul.f32 %v1259_v42, %v1255_v5 }
 0x46f   :  { %v1265_v11 = vsub.f32 %v1172_v32, %v1261_v6  ;;  %v1213_v32 = vld [vmem:[%s2484_s24 + $0x10] sm:$0xff]  ;;  %v1245_v6 = vstv %s1343_s21 }
 0x470   :  { %v1264_v61 = vsub.f32 %v1171_v33, %v1260_v7 }
 0x471   :  { %v1269_v14 = vmul.f32 %v1390_v48, %v1265_v11 }
 0x472   :  { %v1268_v17 = vmul.f32 %v1390_v48, %v1264_v61  ;;  %v1285_v61 = vld [vmem:[%s2449_s8 + $0x8] sm:$0xff] }
 0x473   :  { %1274 = vadd.xlane.f32.xlu1 %v1269_v14  ;;  %v1284_v14 = vld [vmem:[%s2449_s8] sm:$0xff] }
 0x474   :  { %v1254_v18 = vpop.permute.xlu1 %1253  ;;  %1272 = vadd.xlane.f32.xlu0 %v1268_v17 }
 0x475   :  { %v1258_v2 = vadd.f32 %v1254_v18, %v1186_v1  ;;  %v1252_v20 = vpop.permute.xlu0 %1251 }
 0x476   :  { %v1257_v21 = vadd.f32 %v1252_v20, %v1185_v19  ;;  %v1287_v19 = vld [vmem:[%s2449_s8 + $0x18] sm:$0xff]  ;;  %v1286_v20 = vld [vmem:[%s2449_s8 + $0x10] sm:$0xff] }
 0x477   :  { %v1263_v22 = vmul.f32 %v1259_v42, %v1258_v2 }
 0x478   :  { %v1262_v15 = vmul.f32 %v1259_v42, %v1257_v21 }
 0x479   :  { %v1267_v23 = vsub.f32 %v1174_v58, %v1263_v22 }
 0x47a   :  { %v1266_v8 = vsub.f32 %v1173_v59, %v1262_v15  ;;  %v1226_v59 = vld [vmem:[%s2448_s7 + $0x18] sm:$0xff] }
 0x47b   :  { %v1271_v24 = vmul.f32 %v1390_v48, %v1267_v23 }
 0x47c   :  { %v1270_v25 = vmul.f32 %v1390_v48, %v1266_v8 }
 0x47d   :  { %1278 = vadd.xlane.f32.xlu0 %v1271_v24 }
 0x47e   :  { %1276 = vadd.xlane.f32.xlu1 %v1270_v25 }
 0x4af   :  { %v1199_v26 = vpop.xlane.xlu0 %1198 }
 0x4b0   :  { %v1207_v27 = vadd.f32 %v1206_v51, %v1199_v26 }
 0x4b2   :  { %v1215_v29 = vsub.f32 %v1207_v27, %v1211_v16 }
 0x4b3   :  { %v1201_v31 = vpop.xlane.xlu1 %1200  ;;  %v1203_v33 = vpop.xlane.xlu0 %1202 }
 0x4b4   :  { %v1219_v28 = vmul.f32 %v1215_v29, %v1215_v29  ;;  %v1208_v34 = vadd.f32 %v1206_v51, %v1201_v31  ;;  %v1209_v36 = vadd.f32 %v1206_v51, %v1203_v33 }
 0x4b6   :  { %v1216_v41 = vsub.f32 %v1208_v34, %v1212_v30  ;;  %v1217_v44 = vsub.f32 %v1209_v36, %v1213_v32  ;;  %v1227_v50 = vmul.f32 %v1223_v39, %v1219_v28  ;;  %v1305_v28 = vstv %s1344_s4 }
 0x4b7   :  { %v1205_v49 = vpop.xlane.xlu0 %1204  ;;  %v1307_v36 = vstv %s1341_s12 }
 0x4b8   :  { %v1220_v53 = vmul.f32 %v1216_v41, %v1216_v41  ;;  %v1221_v54 = vmul.f32 %v1217_v44, %v1217_v44  ;;  %v1210_v55 = vadd.f32 %v1206_v51, %v1205_v49  ;;  %v1232_v52 = vsel %vm1231_vm0, %v1227_v50, 0.0 }
 0x4ba   :  { %v1228_v56 = vmul.f32 %v1224_v45, %v1220_v53  ;;  %v1229_v57 = vmul.f32 %v1225_v46, %v1221_v54  ;;  %v1218_v58 = vsub.f32 %v1210_v55, %v1214_v47  ;;  %v1311_v45 = vand.u32 127, %v628_v38 }
 0x4bc   :  { %v1233_v48 = vsel %vm1231_vm0, %v1228_v56, 0.0  ;;  %v1222_v43 = vmul.f32 %v1218_v58, %v1218_v58  ;;  %v1235_v62 = vsel %vm1231_vm0, %v1229_v57, 0.0  ;;  %vm1312_vm1 = vcmp.eq.s32.totalorder %v1311_v45, 0 }
 0x4bd   :  { %v1234_v60 = vadd.f32 %v1233_v48, %v1232_v52  ;;  %vm1319_vm2 = vcmp.eq.s32.totalorder %v1311_v45, 1  ;;  %vm1327_vm3 = vcmp.eq.s32.totalorder %v1311_v45, 2 }
 0x4be   :  { %v1230_v0 = vmul.f32 %v1226_v59, %v1222_v43 }
 0x4bf   :  { %v1236_v3 = vadd.f32 %v1235_v62, %v1234_v60 }
 0x4c0   :  { %v1237_v4 = vsel %vm1231_vm0, %v1230_v0, 0.0 }
 0x4c1   :  { %v1238_v37 = vadd.f32 %v1237_v4, %v1236_v3 }
 0x4c3   :  { %v1239_v35 = vrot.slane %v1238_v37, 4 }
 0x4c5   :  { %v1240_v42 = vadd.f32 %v1239_v35, %v1238_v37 }
 0x4c7   :  { %v1241_v40 = vrot.slane %v1240_v42, 2 }
 0x4c9   :  { %v1242_v63 = vadd.f32 %v1241_v40, %v1240_v42 }
 0x4cb   :  { %v1243_v5 = vrot.slane %v1242_v63, 1 }
 0x4cd   :  { %v1244_v7 = vadd.f32 %v1243_v5, %v1242_v63 }
 0x4cf   :  { %v1246_v10 = vmul.f32 %v1245_v6, %v1244_v7 }
 0x4d1   :  { %1322 = vperm.xlu0 %1800, %v1246_v10  }
 0x500   :  { %v1275_v9 = vpop.xlane.xlu1 %1274 }
 0x501   :  { %v1273_v11 = vpop.xlane.xlu0 %1272  ;;  %v1281_v12 = vmul.f32 %v1275_v9, %v1275_v9 }
 0x502   :  { %v1280_v13 = vmul.f32 %v1273_v11, %v1273_v11 }
 0x503   :  { %v1289_v17 = vmul.f32 %v1285_v61, %v1281_v12 }
 0x504   :  { %v1288_v1 = vmul.f32 %v1284_v14, %v1280_v13 }
 0x505   :  { %v1293_v22 = vsel %vm1231_vm0, %v1289_v17, 0.0 }
 0x506   :  { %v1292_v15 = vsel %vm1231_vm0, %v1288_v1, 0.0 }
 0x507   :  { %v1294_v25 = vadd.f32 %v1293_v22, %v1292_v15 }
 0x50a   :  { %v1279_v18 = vpop.xlane.xlu0 %1278 }
 0x50b   :  { %v1283_v2 = vmul.f32 %v1279_v18, %v1279_v18  ;;  %v1277_v21 = vpop.xlane.xlu1 %1276 }
 0x50c   :  { %v1282_v23 = vmul.f32 %v1277_v21, %v1277_v21 }
 0x50d   :  { %v1291_v8 = vmul.f32 %v1287_v19, %v1283_v2 }
 0x50e   :  { %v1290_v24 = vmul.f32 %v1286_v20, %v1282_v23 }
 0x50f   :  { %v1297_v26 = vsel %vm1231_vm0, %v1291_v8, 0.0 }
 0x510   :  { %v1295_v51 = vsel %vm1231_vm0, %v1290_v24, 0.0 }
 0x511   :  { %v1296_v16 = vadd.f32 %v1295_v51, %v1294_v25 }
 0x513   :  { %v1298_v27 = vadd.f32 %v1297_v26, %v1296_v16 }
 0x515   :  { %v1299_v29 = vrot.slane %v1298_v27, 4 }
 0x517   :  { %v1300_v30 = vadd.f32 %v1299_v29, %v1298_v27 }
 0x519   :  { %v1301_v31 = vrot.slane %v1300_v30, 2 }
 0x51b   :  { %v1302_v32 = vadd.f32 %v1301_v31, %v1300_v30 }
 0x51d   :  { %v1303_v33 = vrot.slane %v1302_v32, 1 }
 0x51f   :  { %v1304_v34 = vadd.f32 %v1303_v33, %v1302_v32 }
 0x521   :  { %v1306_v39 = vmul.f32 %v1305_v28, %v1304_v34 }
 0x523   :  { %v1308_v41 = vmul.f32 %v1307_v36, %v1306_v39 }
 0x525   :  { %v1309_v44 = vadd.f32 %v1308_v41, %v1246_v10 }
 0x527   :  { %1315 = vperm.xlu1 %1801, %v1309_v44  }
 0x52b   :  { %1330 = vperm.xlu1 %1801, %v1306_v39  }
 0x550   :  { %v1323_v46 = vpop.permute.xlu0 %1322 }
 0x551   :  { %v1325_v50 = vsel %vm1319_vm2, %v1323_v46, 0.0 }
 0x5a6   :  { %v1316_v47 = vpop.permute.xlu1 %1315 }
 0x5a7   :  { %v1318_v49 = vsel %vm1312_vm1, %v1316_v47, 0.0 }
 0x5a8   :  { %v1326_v53 = vadd.f32 %v1325_v50, %v1318_v49 }
 0x5aa   :  { %v1331_v54 = vpop.permute.xlu1 %1330 }
 0x5ab   :  { %v1333_v55 = vsel %vm1327_vm3, %v1331_v54, 0.0 }
 0x5ac   :  { %v1334_v56 = vadd.f32 %v1333_v55, %v1326_v53 }
 0x5ae   :  { %1335 = vst [vmem:[%s2463_s22] sm:$0x1] %v1334_v56 }
 0x5af   :  { %1340 = vsyncpa [#allocation3], 1 }

</bundles_post_ra>
